<compile_context>
chip_gen: v7x
topology: tpu7x:2x2x1
jax: 0.10.0
libtpu: 0.0.40
codegen_flags: <defaults>
</compile_context>

<pallas_src>
import jax
import jax.numpy as jnp
from jax.experimental import pallas as pl
from jax.experimental.pallas import tpu as pltpu

COORD_SHAPE = (1, 496)
OUT_REAL = 496
OUT_PAD = 512          # lane-dense output slab (4 * 128)
BN_EPS = 0.8           # nn.BatchNorm1d(out_feat, 0.8): second positional arg is eps
LEAKY_SLOPE = 0.2


def _leaky_relu(h):
    return jnp.where(h > 0, h, LEAKY_SLOPE * h)


def _batchnorm_train(h, gamma, beta):
    # Training-mode BatchNorm1d with batch statistics (biased variance).
    # Single-pass variance: E[h^2] - m^2  (safe with eps = 0.8).
    m = jnp.mean(h, axis=0, keepdims=True)
    ex2 = jnp.mean(h * h, axis=0, keepdims=True)
    v = ex2 - m * m
    return (h - m) * jax.lax.rsqrt(v + BN_EPS) * gamma + beta


def decoder_kernel(noise_ref, labels_ref,
                   w1n_ref, w1l_ref, b1_ref,
                   w2_ref, b2_ref, g2_ref, be2_ref,
                   w3_ref, b3_ref, g3_ref, be3_ref,
                   w4_ref, b4_ref, g4_ref, be4_ref,
                   w5_ref, b5_ref,
                   out_ref):
    noise = noise_ref[...]                                   # (B, L) f32
    labels = labels_ref[...]                                 # (B, 1) f32

    # ---- block 1 (no BatchNorm) ---------------------------------------
    # cat(labels, noise) @ W1 == labels * W1[:1] + noise @ W1[1:]
    h = jnp.dot(noise.astype(jnp.bfloat16), w1n_ref[...],
                preferred_element_type=jnp.float32)
    h = h + labels * w1l_ref[...] + b1_ref[...]
    h = _leaky_relu(h)                                       # (B, 64) f32

    # ---- block 2 -------------------------------------------------------
    h = jnp.dot(h.astype(jnp.bfloat16), w2_ref[...],
                preferred_element_type=jnp.float32) + b2_ref[...]
    h = _leaky_relu(_batchnorm_train(h, g2_ref[...], be2_ref[...]))  # (B, 128)

    # ---- block 3 -------------------------------------------------------
    h = jnp.dot(h.astype(jnp.bfloat16), w3_ref[...],
                preferred_element_type=jnp.float32) + b3_ref[...]
    h = _leaky_relu(_batchnorm_train(h, g3_ref[...], be3_ref[...]))  # (B, 256)

    # ---- block 4 -------------------------------------------------------
    h = jnp.dot(h.astype(jnp.bfloat16), w4_ref[...],
                preferred_element_type=jnp.float32) + b4_ref[...]
    h = _leaky_relu(_batchnorm_train(h, g4_ref[...], be4_ref[...]))  # (B, 512)

    # ---- output head (lane-dense, padded to 512 cols) -------------------
    h = jnp.dot(h.astype(jnp.bfloat16), w5_ref[...],
                preferred_element_type=jnp.float32) + b5_ref[...]
    out_ref[...] = jnp.tanh(h)                               # (B, 512); cols >=496 are 0


def init_decoder_params(key, latent_dim):
    """Deterministic synthetic params, PyTorch-style U(-1/sqrt(fan_in), ...).

    Weights are stored bf16 (MXU-native); biases / BN affine stay f32.
    The output-head weight/bias are zero-padded from 496 to 512 columns.
    """
    dims = [latent_dim + 1, 64, 128, 256, 512, OUT_REAL]
    params = {}
    keys = jax.random.split(key, 2 * (len(dims) - 1))

    raw = {}
    for i, (din, dout) in enumerate(zip(dims[:-1], dims[1:])):
        k = 1.0 / jnp.sqrt(jnp.float32(din))
        raw[f"w{i + 1}"] = jax.random.uniform(
            keys[2 * i], (din, dout), jnp.float32, -k, k)
        raw[f"b{i + 1}"] = jax.random.uniform(
            keys[2 * i + 1], (1, dout), jnp.float32, -k, k)

    # Layer 1: split into labels row (kept f32, used as a broadcast multiply)
    # and noise rows (bf16 MXU operand).  Concat order is (labels, noise).
    params["w1l"] = raw["w1"][:1, :]                             # (1, 64) f32
    params["w1n"] = raw["w1"][1:, :].astype(jnp.bfloat16)        # (L, 64) bf16
    params["b1"] = raw["b1"]

    for i in (2, 3, 4):
        params[f"w{i}"] = raw[f"w{i}"].astype(jnp.bfloat16)
        params[f"b{i}"] = raw[f"b{i}"]

    # Output head padded to 512 lanes with exact zeros (tanh(0) = 0 -> inert).
    w5 = jnp.zeros((512, OUT_PAD), jnp.float32).at[:, :OUT_REAL].set(raw["w5"])
    b5 = jnp.zeros((1, OUT_PAD), jnp.float32).at[:, :OUT_REAL].set(raw["b5"])
    params["w5"] = w5.astype(jnp.bfloat16)
    params["b5"] = b5

    # BatchNorm affine params (layers 2..4): gamma=1, beta=0 (fresh module).
    for i, dout in zip((2, 3, 4), (128, 256, 512)):
        params[f"g{i}"] = jnp.ones((1, dout), jnp.float32)
        params[f"be{i}"] = jnp.zeros((1, dout), jnp.float32)
    return params


@jax.jit
def decoder_forward(noise, labels, params):
    batch = noise.shape[0]

    operands = (
        noise.astype(jnp.float32), labels.astype(jnp.float32),
        params["w1n"], params["w1l"], params["b1"],
        params["w2"], params["b2"], params["g2"], params["be2"],
        params["w3"], params["b3"], params["g3"], params["be3"],
        params["w4"], params["b4"], params["g4"], params["be4"],
        params["w5"], params["b5"],
    )
    vmem_spec = pl.BlockSpec(memory_space=pltpu.MemorySpace.VMEM)

    coords_pad = pl.pallas_call(
        decoder_kernel,
        out_shape=jax.ShapeDtypeStruct((batch, OUT_PAD), jnp.float32),
        in_specs=[vmem_spec] * len(operands),
        out_specs=vmem_spec,
    )(*operands)

    # Slice the lane padding off, then reproduce coords.view(B, *coord_shape).
    return coords_pad[:, :OUT_REAL].reshape(batch, *COORD_SHAPE)


if __name__ == "__main__":
    latent_dim = 32
    batch = 8

    root = jax.random.PRNGKey(0)
    k_params, k_noise, k_labels = jax.random.split(root, 3)

    params = init_decoder_params(k_params, latent_dim)
    noise = jax.random.normal(k_noise, (batch, latent_dim), jnp.float32)
    labels = jax.random.normal(k_labels, (batch, 1), jnp.float32)

    coords = decoder_forward(noise, labels, params)
    coords = jax.block_until_ready(coords)

    assert coords.shape == (batch, 1, 496), coords.shape
    assert coords.dtype == jnp.float32
    assert bool(jnp.all(jnp.isfinite(coords)))
    assert bool(jnp.all(jnp.abs(coords) <= 1.0))   # tanh output range
    print("KERNEL_OK")
</pallas_src>

<mosaic_0001>
module attributes {stable_mosaic.version = 11 : i64} {
  func.func @decoder_kernel(%arg0: memref<8x32xf32, #tpu.memory_space<vmem>>, %arg1: memref<8x1xf32, #tpu.memory_space<vmem>>, %arg2: memref<32x64xbf16, #tpu.memory_space<vmem>>, %arg3: memref<1x64xf32, #tpu.memory_space<vmem>>, %arg4: memref<1x64xf32, #tpu.memory_space<vmem>>, %arg5: memref<64x128xbf16, #tpu.memory_space<vmem>>, %arg6: memref<1x128xf32, #tpu.memory_space<vmem>>, %arg7: memref<1x128xf32, #tpu.memory_space<vmem>>, %arg8: memref<1x128xf32, #tpu.memory_space<vmem>>, %arg9: memref<128x256xbf16, #tpu.memory_space<vmem>>, %arg10: memref<1x256xf32, #tpu.memory_space<vmem>>, %arg11: memref<1x256xf32, #tpu.memory_space<vmem>>, %arg12: memref<1x256xf32, #tpu.memory_space<vmem>>, %arg13: memref<256x512xbf16, #tpu.memory_space<vmem>>, %arg14: memref<1x512xf32, #tpu.memory_space<vmem>>, %arg15: memref<1x512xf32, #tpu.memory_space<vmem>>, %arg16: memref<1x512xf32, #tpu.memory_space<vmem>>, %arg17: memref<512x512xbf16, #tpu.memory_space<vmem>>, %arg18: memref<1x512xf32, #tpu.memory_space<vmem>>, %arg19: memref<8x512xf32, #tpu.memory_space<vmem>>) attributes {dimension_semantics = [], scalar_prefetch = 0 : i64, scratch_operands = 0 : i64, tpu.core_type = #tpu.core_type<tc>} {
    %c0 = arith.constant 0 : index
    %c0_0 = arith.constant 0 : index
    %0 = vector.load %arg0[%c0, %c0_0] : memref<8x32xf32, #tpu.memory_space<vmem>>, vector<8x32xf32>
    %c0_1 = arith.constant 0 : index
    %c0_2 = arith.constant 0 : index
    %1 = vector.load %arg1[%c0_1, %c0_2] : memref<8x1xf32, #tpu.memory_space<vmem>>, vector<8x1xf32>
    %2 = arith.truncf %0 : vector<8x32xf32> to vector<8x32xbf16>
    %c0_3 = arith.constant 0 : index
    %c0_4 = arith.constant 0 : index
    %3 = vector.load %arg2[%c0_3, %c0_4] : memref<32x64xbf16, #tpu.memory_space<vmem>>, vector<32x64xbf16>
    %cst = arith.constant dense<0.000000e+00> : vector<8x64xf32>
    %4 = tpu.matmul %2, %3, %cst {dimension_numbers = #tpu.dot_dimension_numbers<[1], [0], [0], [1], [0, 0, 1, 1], [], []>} : vector<8x32xbf16>, vector<32x64xbf16>, vector<8x64xf32> -> vector<8x64xf32>
    %c0_5 = arith.constant 0 : index
    %c0_6 = arith.constant 0 : index
    %5 = vector.load %arg3[%c0_5, %c0_6] : memref<1x64xf32, #tpu.memory_space<vmem>>, vector<1x64xf32>
    %6 = vector.broadcast %1 : vector<8x1xf32> to vector<8x64xf32>
    %7 = vector.broadcast %5 : vector<1x64xf32> to vector<8x64xf32>
    %8 = arith.mulf %6, %7 : vector<8x64xf32>
    %9 = arith.addf %4, %8 : vector<8x64xf32>
    %c0_7 = arith.constant 0 : index
    %c0_8 = arith.constant 0 : index
    %10 = vector.load %arg4[%c0_7, %c0_8] : memref<1x64xf32, #tpu.memory_space<vmem>>, vector<1x64xf32>
    %11 = vector.broadcast %10 : vector<1x64xf32> to vector<8x64xf32>
    %12 = arith.addf %9, %11 : vector<8x64xf32>
    %cst_9 = arith.constant 0.000000e+00 : f32
    %13 = vector.broadcast %cst_9 : f32 to vector<8x64xf32>
    %14 = arith.cmpf ogt, %12, %13 : vector<8x64xf32>
    %cst_10 = arith.constant 2.000000e-01 : f32
    %15 = vector.broadcast %cst_10 : f32 to vector<8x64xf32>
    %16 = arith.mulf %15, %12 : vector<8x64xf32>
    %17 = arith.select %14, %12, %16 : vector<8x64xi1>, vector<8x64xf32>
    %18 = arith.truncf %17 : vector<8x64xf32> to vector<8x64xbf16>
    %c0_11 = arith.constant 0 : index
    %c0_12 = arith.constant 0 : index
    %19 = vector.load %arg5[%c0_11, %c0_12] : memref<64x128xbf16, #tpu.memory_space<vmem>>, vector<64x128xbf16>
    %cst_13 = arith.constant dense<0.000000e+00> : vector<8x128xf32>
    %20 = tpu.matmul %18, %19, %cst_13 {dimension_numbers = #tpu.dot_dimension_numbers<[1], [0], [0], [1], [0, 0, 1, 1], [], []>} : vector<8x64xbf16>, vector<64x128xbf16>, vector<8x128xf32> -> vector<8x128xf32>
    %c0_14 = arith.constant 0 : index
    %c0_15 = arith.constant 0 : index
    %21 = vector.load %arg6[%c0_14, %c0_15] : memref<1x128xf32, #tpu.memory_space<vmem>>, vector<1x128xf32>
    %22 = vector.broadcast %21 : vector<1x128xf32> to vector<8x128xf32>
    %23 = arith.addf %20, %22 : vector<8x128xf32>
    %c0_16 = arith.constant 0 : index
    %c0_17 = arith.constant 0 : index
    %24 = vector.load %arg7[%c0_16, %c0_17] : memref<1x128xf32, #tpu.memory_space<vmem>>, vector<1x128xf32>
    %c0_18 = arith.constant 0 : index
    %c0_19 = arith.constant 0 : index
    %25 = vector.load %arg8[%c0_18, %c0_19] : memref<1x128xf32, #tpu.memory_space<vmem>>, vector<1x128xf32>
    %cst_20 = arith.constant dense<0.000000e+00> : vector<128xf32>
    %26 = vector.multi_reduction <add>, %23, %cst_20 [0] : vector<8x128xf32> to vector<128xf32>
    %27 = vector.shape_cast %26 : vector<128xf32> to vector<1x128xf32>
    %cst_21 = arith.constant 8.000000e+00 : f32
    %28 = vector.broadcast %cst_21 : f32 to vector<1x128xf32>
    %29 = arith.divf %27, %28 : vector<1x128xf32>
    %30 = arith.mulf %23, %23 : vector<8x128xf32>
    %cst_22 = arith.constant dense<0.000000e+00> : vector<128xf32>
    %31 = vector.multi_reduction <add>, %30, %cst_22 [0] : vector<8x128xf32> to vector<128xf32>
    %32 = vector.shape_cast %31 : vector<128xf32> to vector<1x128xf32>
    %cst_23 = arith.constant 8.000000e+00 : f32
    %33 = vector.broadcast %cst_23 : f32 to vector<1x128xf32>
    %34 = arith.divf %32, %33 : vector<1x128xf32>
    %35 = arith.mulf %29, %29 : vector<1x128xf32>
    %36 = arith.subf %34, %35 : vector<1x128xf32>
    %37 = vector.broadcast %29 : vector<1x128xf32> to vector<8x128xf32>
    %38 = arith.subf %23, %37 : vector<8x128xf32>
    %cst_24 = arith.constant 8.000000e-01 : f32
    %39 = vector.broadcast %cst_24 : f32 to vector<1x128xf32>
    %40 = arith.addf %36, %39 : vector<1x128xf32>
    %41 = math.rsqrt %40 : vector<1x128xf32>
    %42 = vector.broadcast %41 : vector<1x128xf32> to vector<8x128xf32>
    %43 = arith.mulf %38, %42 : vector<8x128xf32>
    %44 = vector.broadcast %24 : vector<1x128xf32> to vector<8x128xf32>
    %45 = arith.mulf %43, %44 : vector<8x128xf32>
    %46 = vector.broadcast %25 : vector<1x128xf32> to vector<8x128xf32>
    %47 = arith.addf %45, %46 : vector<8x128xf32>
    %cst_25 = arith.constant 0.000000e+00 : f32
    %48 = vector.broadcast %cst_25 : f32 to vector<8x128xf32>
    %49 = arith.cmpf ogt, %47, %48 : vector<8x128xf32>
    %cst_26 = arith.constant 2.000000e-01 : f32
    %50 = vector.broadcast %cst_26 : f32 to vector<8x128xf32>
    %51 = arith.mulf %50, %47 : vector<8x128xf32>
    %52 = arith.select %49, %47, %51 : vector<8x128xi1>, vector<8x128xf32>
    %53 = arith.truncf %52 : vector<8x128xf32> to vector<8x128xbf16>
    %c0_27 = arith.constant 0 : index
    %c0_28 = arith.constant 0 : index
    %54 = vector.load %arg9[%c0_27, %c0_28] : memref<128x256xbf16, #tpu.memory_space<vmem>>, vector<128x256xbf16>
    %cst_29 = arith.constant dense<0.000000e+00> : vector<8x256xf32>
    %55 = tpu.matmul %53, %54, %cst_29 {dimension_numbers = #tpu.dot_dimension_numbers<[1], [0], [0], [1], [0, 0, 1, 1], [], []>} : vector<8x128xbf16>, vector<128x256xbf16>, vector<8x256xf32> -> vector<8x256xf32>
    %c0_30 = arith.constant 0 : index
    %c0_31 = arith.constant 0 : index
    %56 = vector.load %arg10[%c0_30, %c0_31] : memref<1x256xf32, #tpu.memory_space<vmem>>, vector<1x256xf32>
    %57 = vector.broadcast %56 : vector<1x256xf32> to vector<8x256xf32>
    %58 = arith.addf %55, %57 : vector<8x256xf32>
    %c0_32 = arith.constant 0 : index
    %c0_33 = arith.constant 0 : index
    %59 = vector.load %arg11[%c0_32, %c0_33] : memref<1x256xf32, #tpu.memory_space<vmem>>, vector<1x256xf32>
    %c0_34 = arith.constant 0 : index
    %c0_35 = arith.constant 0 : index
    %60 = vector.load %arg12[%c0_34, %c0_35] : memref<1x256xf32, #tpu.memory_space<vmem>>, vector<1x256xf32>
    %cst_36 = arith.constant dense<0.000000e+00> : vector<256xf32>
    %61 = vector.multi_reduction <add>, %58, %cst_36 [0] : vector<8x256xf32> to vector<256xf32>
    %62 = vector.shape_cast %61 : vector<256xf32> to vector<1x256xf32>
    %cst_37 = arith.constant 8.000000e+00 : f32
    %63 = vector.broadcast %cst_37 : f32 to vector<1x256xf32>
    %64 = arith.divf %62, %63 : vector<1x256xf32>
    %65 = arith.mulf %58, %58 : vector<8x256xf32>
    %cst_38 = arith.constant dense<0.000000e+00> : vector<256xf32>
    %66 = vector.multi_reduction <add>, %65, %cst_38 [0] : vector<8x256xf32> to vector<256xf32>
    %67 = vector.shape_cast %66 : vector<256xf32> to vector<1x256xf32>
    %cst_39 = arith.constant 8.000000e+00 : f32
    %68 = vector.broadcast %cst_39 : f32 to vector<1x256xf32>
    %69 = arith.divf %67, %68 : vector<1x256xf32>
    %70 = arith.mulf %64, %64 : vector<1x256xf32>
    %71 = arith.subf %69, %70 : vector<1x256xf32>
    %72 = vector.broadcast %64 : vector<1x256xf32> to vector<8x256xf32>
    %73 = arith.subf %58, %72 : vector<8x256xf32>
    %cst_40 = arith.constant 8.000000e-01 : f32
    %74 = vector.broadcast %cst_40 : f32 to vector<1x256xf32>
    %75 = arith.addf %71, %74 : vector<1x256xf32>
    %76 = math.rsqrt %75 : vector<1x256xf32>
    %77 = vector.broadcast %76 : vector<1x256xf32> to vector<8x256xf32>
    %78 = arith.mulf %73, %77 : vector<8x256xf32>
    %79 = vector.broadcast %59 : vector<1x256xf32> to vector<8x256xf32>
    %80 = arith.mulf %78, %79 : vector<8x256xf32>
    %81 = vector.broadcast %60 : vector<1x256xf32> to vector<8x256xf32>
    %82 = arith.addf %80, %81 : vector<8x256xf32>
    %cst_41 = arith.constant 0.000000e+00 : f32
    %83 = vector.broadcast %cst_41 : f32 to vector<8x256xf32>
    %84 = arith.cmpf ogt, %82, %83 : vector<8x256xf32>
    %cst_42 = arith.constant 2.000000e-01 : f32
    %85 = vector.broadcast %cst_42 : f32 to vector<8x256xf32>
    %86 = arith.mulf %85, %82 : vector<8x256xf32>
    %87 = arith.select %84, %82, %86 : vector<8x256xi1>, vector<8x256xf32>
    %88 = arith.truncf %87 : vector<8x256xf32> to vector<8x256xbf16>
    %c0_43 = arith.constant 0 : index
    %c0_44 = arith.constant 0 : index
    %89 = vector.load %arg13[%c0_43, %c0_44] : memref<256x512xbf16, #tpu.memory_space<vmem>>, vector<256x512xbf16>
    %cst_45 = arith.constant dense<0.000000e+00> : vector<8x512xf32>
    %90 = tpu.matmul %88, %89, %cst_45 {dimension_numbers = #tpu.dot_dimension_numbers<[1], [0], [0], [1], [0, 0, 1, 1], [], []>} : vector<8x256xbf16>, vector<256x512xbf16>, vector<8x512xf32> -> vector<8x512xf32>
    %c0_46 = arith.constant 0 : index
    %c0_47 = arith.constant 0 : index
    %91 = vector.load %arg14[%c0_46, %c0_47] : memref<1x512xf32, #tpu.memory_space<vmem>>, vector<1x512xf32>
    %92 = vector.broadcast %91 : vector<1x512xf32> to vector<8x512xf32>
    %93 = arith.addf %90, %92 : vector<8x512xf32>
    %c0_48 = arith.constant 0 : index
    %c0_49 = arith.constant 0 : index
    %94 = vector.load %arg15[%c0_48, %c0_49] : memref<1x512xf32, #tpu.memory_space<vmem>>, vector<1x512xf32>
    %c0_50 = arith.constant 0 : index
    %c0_51 = arith.constant 0 : index
    %95 = vector.load %arg16[%c0_50, %c0_51] : memref<1x512xf32, #tpu.memory_space<vmem>>, vector<1x512xf32>
    %cst_52 = arith.constant dense<0.000000e+00> : vector<512xf32>
    %96 = vector.multi_reduction <add>, %93, %cst_52 [0] : vector<8x512xf32> to vector<512xf32>
    %97 = vector.shape_cast %96 : vector<512xf32> to vector<1x512xf32>
    %cst_53 = arith.constant 8.000000e+00 : f32
    %98 = vector.broadcast %cst_53 : f32 to vector<1x512xf32>
    %99 = arith.divf %97, %98 : vector<1x512xf32>
    %100 = arith.mulf %93, %93 : vector<8x512xf32>
    %cst_54 = arith.constant dense<0.000000e+00> : vector<512xf32>
    %101 = vector.multi_reduction <add>, %100, %cst_54 [0] : vector<8x512xf32> to vector<512xf32>
    %102 = vector.shape_cast %101 : vector<512xf32> to vector<1x512xf32>
    %cst_55 = arith.constant 8.000000e+00 : f32
    %103 = vector.broadcast %cst_55 : f32 to vector<1x512xf32>
    %104 = arith.divf %102, %103 : vector<1x512xf32>
    %105 = arith.mulf %99, %99 : vector<1x512xf32>
    %106 = arith.subf %104, %105 : vector<1x512xf32>
    %107 = vector.broadcast %99 : vector<1x512xf32> to vector<8x512xf32>
    %108 = arith.subf %93, %107 : vector<8x512xf32>
    %cst_56 = arith.constant 8.000000e-01 : f32
    %109 = vector.broadcast %cst_56 : f32 to vector<1x512xf32>
    %110 = arith.addf %106, %109 : vector<1x512xf32>
    %111 = math.rsqrt %110 : vector<1x512xf32>
    %112 = vector.broadcast %111 : vector<1x512xf32> to vector<8x512xf32>
    %113 = arith.mulf %108, %112 : vector<8x512xf32>
    %114 = vector.broadcast %94 : vector<1x512xf32> to vector<8x512xf32>
    %115 = arith.mulf %113, %114 : vector<8x512xf32>
    %116 = vector.broadcast %95 : vector<1x512xf32> to vector<8x512xf32>
    %117 = arith.addf %115, %116 : vector<8x512xf32>
    %cst_57 = arith.constant 0.000000e+00 : f32
    %118 = vector.broadcast %cst_57 : f32 to vector<8x512xf32>
    %119 = arith.cmpf ogt, %117, %118 : vector<8x512xf32>
    %cst_58 = arith.constant 2.000000e-01 : f32
    %120 = vector.broadcast %cst_58 : f32 to vector<8x512xf32>
    %121 = arith.mulf %120, %117 : vector<8x512xf32>
    %122 = arith.select %119, %117, %121 : vector<8x512xi1>, vector<8x512xf32>
    %123 = arith.truncf %122 : vector<8x512xf32> to vector<8x512xbf16>
    %c0_59 = arith.constant 0 : index
    %c0_60 = arith.constant 0 : index
    %124 = vector.load %arg17[%c0_59, %c0_60] : memref<512x512xbf16, #tpu.memory_space<vmem>>, vector<512x512xbf16>
    %cst_61 = arith.constant dense<0.000000e+00> : vector<8x512xf32>
    %125 = tpu.matmul %123, %124, %cst_61 {dimension_numbers = #tpu.dot_dimension_numbers<[1], [0], [0], [1], [0, 0, 1, 1], [], []>} : vector<8x512xbf16>, vector<512x512xbf16>, vector<8x512xf32> -> vector<8x512xf32>
    %c0_62 = arith.constant 0 : index
    %c0_63 = arith.constant 0 : index
    %126 = vector.load %arg18[%c0_62, %c0_63] : memref<1x512xf32, #tpu.memory_space<vmem>>, vector<1x512xf32>
    %127 = vector.broadcast %126 : vector<1x512xf32> to vector<8x512xf32>
    %128 = arith.addf %125, %127 : vector<8x512xf32>
    %129 = math.tanh %128 : vector<8x512xf32>
    %c0_64 = arith.constant 0 : index
    %c0_65 = arith.constant 0 : index
    %130 = vector.load %arg19[%c0_64, %c0_65] : memref<8x512xf32, #tpu.memory_space<vmem>>, vector<8x512xf32>
    tpu.vector_store %arg19[%c0_64, %c0_65], %129 {strides = array<i32>} : memref<8x512xf32, #tpu.memory_space<vmem>>, vector<8x512xf32>,
    return
  }
}

</mosaic_0001>

<bundles_post_ra>
// kernel: decoder_forward.1
= control target key start
LH: loop header
LB: loop body
LE: loop exit
PB: predicated region body
PF: predicated region fallthrough
CT: control target
= control target key end

     0   :  { %s3553_s0 = inlined_call_operand.vmem [shape: f32[8,32], index: 0, kind: input, shape index: {}]   ;;  %s3554_s1 = inlined_call_operand.vmem [shape: f32[8,1], index: 1, kind: input, shape index: {}]   ;;  %s3555_s2 = inlined_call_operand.vmem [shape: bf16[32,64], index: 2, kind: input, shape index: {}]   ;;  %s3556_s3 = inlined_call_operand.vmem [shape: f32[1,64], index: 3, kind: input, shape index: {}]   ;;  %s3557_s4 = inlined_call_operand.hbm [shape: f32[1,64], index: 4, kind: input, shape index: {}]   ;;  %s3558_s5 = inlined_call_operand.vmem [shape: bf16[64,128], index: 5, kind: input, shape index: {}]   ;;  %s3559_s6 = inlined_call_operand.hbm [shape: f32[1,128], index: 6, kind: input, shape index: {}]   ;;  %s3560_s7 = inlined_call_operand.hbm [shape: f32[1,128], index: 7, kind: input, shape index: {}]   ;;  %s3561_s8 = inlined_call_operand.hbm [shape: f32[1,128], index: 8, kind: input, shape index: {}]   ;;  %s3562_s9 = inlined_call_operand.hbm [shape: bf16[128,256], index: 9, kind: input, shape index: {}]   ;;  %s3563_s10 = inlined_call_operand.hbm [shape: f32[1,256], index: 10, kind: input, shape index: {}]   ;;  %s3564_s11 = inlined_call_operand.hbm [shape: f32[1,256], index: 11, kind: input, shape index: {}]   ;;  %s3565_s12 = inlined_call_operand.hbm [shape: f32[1,256], index: 12, kind: input, shape index: {}]   ;;  %s3566_s13 = inlined_call_operand.hbm [shape: bf16[256,512], index: 13, kind: input, shape index: {}]   ;;  %s3567_s14 = inlined_call_operand.vmem [shape: f32[1,512], index: 14, kind: input, shape index: {}]   ;;  %s3568_s15 = inlined_call_operand.vmem [shape: f32[1,512], index: 15, kind: input, shape index: {}]   ;;  %s3569_s16 = inlined_call_operand.hbm [shape: f32[1,512], index: 16, kind: input, shape index: {}]   ;;  %s3570_s17 = inlined_call_operand.hbm [shape: bf16[512,512], index: 17, kind: input, shape index: {}]   ;;  %s3571_s18 = inlined_call_operand.hbm [shape: f32[1,512], index: 18, kind: input, shape index: {}]   ;;  %s3572_s19 = inlined_call_operand.vmem [shape: f32[8,512], index: 19, kind: output, shape index: {}]  }
   0x1   :  { %3574 = sst [smem:[#allocation28_spill]] %s3553_s0 }
   0x2   :  { %3575 = sst [smem:[#allocation29_spill]] %s3554_s1 }
   0x3   :  { %3576 = sst [smem:[#allocation30_spill]] %s3555_s2 }
   0x4   :  { %3577 = sst [smem:[#allocation31_spill]] %s3556_s3 }
   0x5   :  { %24 = vsyncpa [#allocation3], 0 }
   0x6   :  { %25 = vsyncpa [#allocation5], 0 }
   0x7   :  { %26 = vsyncpa [#allocation8], 0 }
   0x8   :  { %27 = vsyncpa [#allocation11], 0 }
   0x9   :  { %28 = vsyncpa [#allocation14], 0 }
   0xa   :  { %29 = vsyncpa [#allocation17], 0 }
   0xb   :  { %30 = vsyncpa [#allocation20], 0  ;;  %s3160_s0 = smov [#allocation4]   ;;  %s3161_s20 = smov [#allocation7]  }
   0xc   :  { %s57_s30 = sshll.u32 %s3160_s0, 4  ;;  %s77_s21 = sshll.u32 %s3161_s20, 4  ;;  %s58_s30 = int_to_ptr.vmem [resolvable:$true] %s57_s30  ;;  %s78_s21 = int_to_ptr.vmem [resolvable:$true] %s77_s21 }
   0xd   :  { %s2882_s2 = scalar_lea.hbm %s3559_s6, 16 }
   0xe   :  { %p2883_p0 = scmp.ne.s32.totalorder %s3559_s6, %s2882_s2  ;;  %p2886_p1 = scmp.lt.u32.totalorder %s2882_s2, %s3559_s6 }
  0x10   :  { %p2888_p2 = pnand %p2886_p1, %p2883_p0 }
  0x12   :  { %2891 = shalt.err (!%p2888_p2)
}
  0x13   :  { %s2892_s26 = scalar_lea.vmem %s58_s30, 16  ;;  %s2896_s27 = scalar_lea.vmem %s58_s30, 32 }
  0x14   :  { %p2893_p3 = scmp.ne.s32.totalorder %s58_s30, %s2892_s26  ;;  %p2897_p4 = scmp.lt.s32.totalorder %s58_s30, %s58_s30 }
  0x15   :  { %p2898_p5 = scmp.lt.s32.totalorder %s2896_s27, %s2892_s26 }
  0x17   :  { %p2899_p6 = por %p2898_p5, %p2897_p4 }
  0x19   :  { %p2900_p7 = pnand %p2899_p6, %p2893_p3 }
  0x1b   :  { %2903 = shalt.err (!%p2900_p7)
}
  0x1c   :  { %60 = dma.hbm_to_vmem [thread:$0]  %s3559_s6, 16, %s58_s30, [#allocation5]  }
  0x1d   :  { %s2904_s1 = scalar_lea.hbm %s3561_s8, 16 }
  0x1e   :  { %p2905_p8 = scmp.ne.s32.totalorder %s3561_s8, %s2904_s1  ;;  %p2908_p9 = scmp.lt.u32.totalorder %s2904_s1, %s3561_s8 }
  0x20   :  { %p2910_p10 = pnand %p2908_p9, %p2905_p8 }
  0x22   :  { %2913 = shalt.err (!%p2910_p10)
}
  0x23   :  { %s2914_s25 = scalar_lea.vmem %s78_s21, 16  ;;  %s2918_s3 = scalar_lea.vmem %s78_s21, 32 }
  0x24   :  { %p2915_p11 = scmp.ne.s32.totalorder %s78_s21, %s2914_s25  ;;  %p2919_p12 = scmp.lt.s32.totalorder %s78_s21, %s78_s21 }
  0x25   :  { %p2920_p13 = scmp.lt.s32.totalorder %s2918_s3, %s2914_s25 }
  0x27   :  { %p2921_p0 = por %p2920_p13, %p2919_p12 }
  0x29   :  { %p2922_p1 = pnand %p2921_p0, %p2915_p11 }
  0x2b   :  { %2925 = shalt.err (!%p2922_p1)
}
  0x2c   :  { %80 = dma.hbm_to_vmem [thread:$0]  %s3561_s8, 16, %s78_s21, [#allocation8]  }
  0x2d   :  { %s3162_s26 = smov [#allocation10]   ;;  %s3163_s28 = smov [#allocation13]  }
  0x2e   :  { %s99_s27 = sshll.u32 %s3162_s26, 4  ;;  %s119_s29 = sshll.u32 %s3163_s28, 4  ;;  %s100_s27 = int_to_ptr.vmem [resolvable:$true] %s99_s27  ;;  %s120_s29 = int_to_ptr.vmem [resolvable:$true] %s119_s29 }
  0x2f   :  { %s2926_s1 = scalar_lea.hbm %s3563_s10, 32 }
  0x30   :  { %p2927_p2 = scmp.ne.s32.totalorder %s3563_s10, %s2926_s1  ;;  %p2930_p3 = scmp.lt.u32.totalorder %s2926_s1, %s3563_s10 }
  0x32   :  { %p2932_p4 = pnand %p2930_p3, %p2927_p2 }
  0x34   :  { %2935 = shalt.err (!%p2932_p4)
}
  0x35   :  { %s2936_s8 = scalar_lea.vmem %s100_s27, 32  ;;  %p2941_p6 = scmp.lt.s32.totalorder %s100_s27, %s100_s27 }
  0x36   :  { %p2937_p5 = scmp.ne.s32.totalorder %s100_s27, %s2936_s8  ;;  %p2942_p7 = scmp.lt.s32.totalorder %s2936_s8, %s2936_s8 }
  0x38   :  { %p2943_p8 = por %p2942_p7, %p2941_p6 }
  0x3a   :  { %p2944_p9 = pnand %p2943_p8, %p2937_p5 }
  0x3c   :  { %2947 = shalt.err (!%p2944_p9)
}
  0x3d   :  { %102 = dma.hbm_to_vmem [thread:$0]  %s3563_s10, 32, %s100_s27, [#allocation11]  }
  0x3e   :  { %s2948_s30 = scalar_lea.hbm %s3565_s12, 32 }
  0x3f   :  { %p2949_p10 = scmp.ne.s32.totalorder %s3565_s12, %s2948_s30  ;;  %p2952_p11 = scmp.lt.u32.totalorder %s2948_s30, %s3565_s12 }
  0x41   :  { %p2954_p12 = pnand %p2952_p11, %p2949_p10 }
  0x43   :  { %2957 = shalt.err (!%p2954_p12)
}
  0x44   :  { %s2958_s1 = scalar_lea.vmem %s120_s29, 32  ;;  %p2963_p0 = scmp.lt.s32.totalorder %s120_s29, %s120_s29 }
  0x45   :  { %p2959_p13 = scmp.ne.s32.totalorder %s120_s29, %s2958_s1  ;;  %p2964_p1 = scmp.lt.s32.totalorder %s2958_s1, %s2958_s1 }
  0x47   :  { %p2965_p2 = por %p2964_p1, %p2963_p0 }
  0x49   :  { %p2966_p3 = pnand %p2965_p2, %p2959_p13 }
  0x4b   :  { %2969 = shalt.err (!%p2966_p3)
}
  0x4c   :  { %122 = dma.hbm_to_vmem [thread:$0]  %s3565_s12, 32, %s120_s29, [#allocation14]  }
  0x4d   :  { %s3164_s22 = smov [#allocation16]   ;;  %s3165_s23 = smov [#allocation2]  }
  0x4e   :  { %s145_s2 = sshll.u32 %s3164_s22, 4  ;;  %s45_s24 = sshll.u32 %s3165_s23, 4  ;;  %s146_s2 = int_to_ptr.vmem [resolvable:$true] %s145_s2  ;;  %s46_s24 = int_to_ptr.vmem [resolvable:$true] %s45_s24 }
  0x4f   :  { %s2970_s25 = scalar_lea.hbm %s3569_s16, 64 }
  0x50   :  { %p2971_p4 = scmp.ne.s32.totalorder %s3569_s16, %s2970_s25  ;;  %p2974_p5 = scmp.lt.u32.totalorder %s2970_s25, %s3569_s16 }
  0x52   :  { %p2976_p6 = pnand %p2974_p5, %p2971_p4 }
  0x54   :  { %2979 = shalt.err (!%p2976_p6)
}
  0x55   :  { %s2980_s12 = scalar_lea.vmem %s146_s2, 64  ;;  %p2985_p8 = scmp.lt.s32.totalorder %s146_s2, %s146_s2 }
  0x56   :  { %p2981_p7 = scmp.ne.s32.totalorder %s146_s2, %s2980_s12  ;;  %p2986_p9 = scmp.lt.s32.totalorder %s2980_s12, %s2980_s12 }
  0x58   :  { %p2987_p10 = por %p2986_p9, %p2985_p8 }
  0x5a   :  { %p2988_p11 = pnand %p2987_p10, %p2981_p7 }
  0x5c   :  { %2991 = shalt.err (!%p2988_p11)
}
  0x5d   :  { %148 = dma.hbm_to_vmem [thread:$0]  %s3569_s16, 64, %s146_s2, [#allocation17]  }
  0x5e   :  { %s2992_s1 = scalar_lea.hbm %s3557_s4, 16 }
  0x5f   :  { %p2993_p12 = scmp.ne.s32.totalorder %s3557_s4, %s2992_s1  ;;  %p2996_p13 = scmp.lt.u32.totalorder %s2992_s1, %s3557_s4 }
  0x61   :  { %p2998_p0 = pnand %p2996_p13, %p2993_p12 }
  0x63   :  { %3001 = shalt.err (!%p2998_p0)
}
  0x64   :  { %s3002_s8 = scalar_lea.vmem %s46_s24, 16  ;;  %s3006_s21 = scalar_lea.vmem %s46_s24, 32 }
  0x65   :  { %p3003_p1 = scmp.ne.s32.totalorder %s46_s24, %s3002_s8  ;;  %p3007_p2 = scmp.lt.s32.totalorder %s46_s24, %s46_s24 }
  0x66   :  { %p3008_p3 = scmp.lt.s32.totalorder %s3006_s21, %s3002_s8 }
  0x68   :  { %p3009_p4 = por %p3008_p3, %p3007_p2 }
  0x6a   :  { %p3010_p5 = pnand %p3009_p4, %p3003_p1 }
  0x6c   :  { %3013 = shalt.err (!%p3010_p5)
}
  0x6d   :  { %48 = dma.hbm_to_vmem [thread:$0]  %s3557_s4, 16, %s46_s24, [#allocation3]  }
  0x6e   :  { %s3166_s25 = smov [#allocation6]   ;;  %s3167_s6 = smov [#allocation9]  }
  0x6f   :  { %s67_s3 = sshll.u32 %s3166_s25, 4  ;;  %s86_s30 = sshll.u32 %s3167_s6, 4  ;;  %s68_s3 = int_to_ptr.vmem [resolvable:$true] %s67_s3  ;;  %s3351_s30 = int_to_ptr.vmem [resolvable:$true] %s86_s30 }
  0x70   :  { %s3014_s29 = scalar_lea.hbm %s3560_s7, 16 }
  0x71   :  { %p3015_p6 = scmp.ne.s32.totalorder %s3560_s7, %s3014_s29  ;;  %p3018_p7 = scmp.lt.u32.totalorder %s3014_s29, %s3560_s7 }
  0x73   :  { %p3020_p8 = pnand %p3018_p7, %p3015_p6 }
  0x75   :  { %3023 = shalt.err (!%p3020_p8)
}
  0x76   :  { %s3024_s4 = scalar_lea.vmem %s68_s3, 16  ;;  %s3028_s24 = scalar_lea.vmem %s68_s3, 32 }
  0x77   :  { %p3025_p9 = scmp.ne.s32.totalorder %s68_s3, %s3024_s4  ;;  %p3029_p10 = scmp.lt.s32.totalorder %s68_s3, %s68_s3 }
  0x78   :  { %p3030_p11 = scmp.lt.s32.totalorder %s3028_s24, %s3024_s4 }
  0x7a   :  { %p3031_p12 = por %p3030_p11, %p3029_p10 }
  0x7c   :  { %p3032_p13 = pnand %p3031_p12, %p3025_p9 }
  0x7e   :  { %3035 = shalt.err (!%p3032_p13)
}
  0x7f   :  { %70 = dma.hbm_to_vmem [thread:$0]  %s3560_s7, 16, %s68_s3, [#allocation5]  }
  0x80   :  { %s3036_s8 = scalar_lea.hbm %s3562_s9, 2048 }
  0x81   :  { %p3037_p0 = scmp.ne.s32.totalorder %s3562_s9, %s3036_s8  ;;  %p3040_p1 = scmp.lt.u32.totalorder %s3036_s8, %s3562_s9 }
  0x83   :  { %p3042_p2 = pnand %p3040_p1, %p3037_p0 }
  0x85   :  { %3045 = shalt.err (!%p3042_p2)
}
  0x86   :  { %s3046_s6 = scalar_lea.vmem %s3351_s30, 2048  ;;  %p3051_p4 = scmp.lt.s32.totalorder %s3351_s30, %s3351_s30 }
  0x87   :  { %p3047_p3 = scmp.ne.s32.totalorder %s3351_s30, %s3046_s6  ;;  %p3052_p5 = scmp.lt.s32.totalorder %s3046_s6, %s3046_s6 }
  0x89   :  { %p3053_p6 = por %p3052_p5, %p3051_p4 }
  0x8b   :  { %p3054_p7 = pnand %p3053_p6, %p3047_p3 }
  0x8d   :  { %3057 = shalt.err (!%p3054_p7)
}
  0x8e   :  { %s3168_s7 = smov 128   ;;  %s3169_s3 = smov 8  }
  0x8f   :  { %92 = dma.hbm_to_vmem [thread:$0]  %s3562_s9, 2048, %s3351_s30, [#allocation8], %s3168_s7, %s3168_s7, %s3169_s3  }
  0x90   :  { %s3170_s29 = smov [#allocation12]   ;;  %s3171_s0 = smov [#allocation15]  }
  0x91   :  { %s109_s28 = sshll.u32 %s3170_s29, 4  ;;  %s128_s20 = sshll.u32 %s3171_s0, 4  ;;  %s110_s28 = int_to_ptr.vmem [resolvable:$true] %s109_s28  ;;  %s3382_s20 = int_to_ptr.vmem [resolvable:$true] %s128_s20 }
  0x92   :  { %s3058_s24 = scalar_lea.hbm %s3564_s11, 32 }
  0x93   :  { %p3059_p8 = scmp.ne.s32.totalorder %s3564_s11, %s3058_s24  ;;  %p3062_p9 = scmp.lt.u32.totalorder %s3058_s24, %s3564_s11 }
  0x95   :  { %p3064_p10 = pnand %p3062_p9, %p3059_p8 }
  0x97   :  { %3067 = shalt.err (!%p3064_p10)
}
  0x98   :  { %s3068_s9 = scalar_lea.vmem %s110_s28, 32  ;;  %p3073_p12 = scmp.lt.s32.totalorder %s110_s28, %s110_s28 }
  0x99   :  { %p3069_p11 = scmp.ne.s32.totalorder %s110_s28, %s3068_s9  ;;  %p3074_p13 = scmp.lt.s32.totalorder %s3068_s9, %s3068_s9 }
  0x9b   :  { %p3075_p0 = por %p3074_p13, %p3073_p12 }
  0x9d   :  { %p3076_p1 = pnand %p3075_p0, %p3069_p11 }
  0x9f   :  { %3079 = shalt.err (!%p3076_p1)
}
  0xa0   :  { %112 = dma.hbm_to_vmem [thread:$0]  %s3564_s11, 32, %s110_s28, [#allocation11]  }
  0xa1   :  { %s3080_s2 = scalar_lea.hbm %s3566_s13, 8192 }
  0xa2   :  { %p3081_p2 = scmp.ne.s32.totalorder %s3566_s13, %s3080_s2  ;;  %p3084_p3 = scmp.lt.u32.totalorder %s3080_s2, %s3566_s13 }
  0xa4   :  { %p3086_p4 = pnand %p3084_p3, %p3081_p2 }
  0xa6   :  { %3089 = shalt.err (!%p3086_p4)
}
  0xa7   :  { %s3090_s26 = scalar_lea.vmem %s3382_s20, 8192  ;;  %p3095_p6 = scmp.lt.s32.totalorder %s3382_s20, %s3382_s20 }
  0xa8   :  { %p3091_p5 = scmp.ne.s32.totalorder %s3382_s20, %s3090_s26  ;;  %p3096_p7 = scmp.lt.s32.totalorder %s3090_s26, %s3090_s26 }
  0xaa   :  { %p3097_p8 = por %p3096_p7, %p3095_p6 }
  0xac   :  { %p3098_p9 = pnand %p3097_p8, %p3091_p5 }
  0xae   :  { %3101 = shalt.err (!%p3098_p9)
}
  0xaf   :  { %s3172_s11 = smov 256   ;;  %s3173_s12 = smov 16  }
  0xb0   :  { %134 = dma.hbm_to_vmem [thread:$0]  %s3566_s13, 8192, %s3382_s20, [#allocation14], %s3172_s11, %s3172_s11, %s3173_s12  }
  0xb1   :  { %s3174_s0 = smov [#allocation18]   ;;  %s3175_s4 = smov [#allocation19]  }
  0xb2   :  { %s154_s1 = sshll.u32 %s3174_s0, 4  ;;  %s167_s24 = sshll.u32 %s3175_s4, 4  ;;  %s155_s1 = int_to_ptr.vmem [resolvable:$true] %s154_s1  ;;  %s168_s24 = int_to_ptr.vmem [resolvable:$true] %s167_s24 }
  0xb3   :  { %s3102_s22 = scalar_lea.hbm %s3570_s17, 16384 }
  0xb4   :  { %p3103_p10 = scmp.ne.s32.totalorder %s3570_s17, %s3102_s22  ;;  %p3106_p11 = scmp.lt.u32.totalorder %s3102_s22, %s3570_s17 }
  0xb6   :  { %p3108_p12 = pnand %p3106_p11, %p3103_p10 }
  0xb8   :  { %3111 = shalt.err (!%p3108_p12)
}
  0xb9   :  { %s3112_s13 = scalar_lea.vmem %s155_s1, 16384  ;;  %p3117_p0 = scmp.lt.s32.totalorder %s155_s1, %s155_s1 }
  0xba   :  { %p3113_p13 = scmp.ne.s32.totalorder %s155_s1, %s3112_s13  ;;  %p3118_p1 = scmp.lt.s32.totalorder %s3112_s13, %s3112_s13 }
  0xbc   :  { %p3119_p2 = por %p3118_p1, %p3117_p0 }
  0xbe   :  { %p3120_p3 = pnand %p3119_p2, %p3113_p13 }
  0xc0   :  { %3123 = shalt.err (!%p3120_p3)
}
  0xc1   :  { %160 = dma.hbm_to_vmem [thread:$0]  %s3570_s17, 16384, %s155_s1, [#allocation17], %s3172_s11, %s3172_s11, %s3173_s12  }
  0xc2   :  { %s3124_s25 = scalar_lea.hbm %s3571_s18, 64 }
  0xc3   :  { %p3125_p4 = scmp.ne.s32.totalorder %s3571_s18, %s3124_s25  ;;  %p3128_p5 = scmp.lt.u32.totalorder %s3124_s25, %s3571_s18 }
  0xc5   :  { %p3130_p6 = pnand %p3128_p5, %p3125_p4 }
  0xc7   :  { %3133 = shalt.err (!%p3130_p6)
}
  0xc8   :  { %s3134_s29 = scalar_lea.vmem %s168_s24, 64  ;;  %p3139_p8 = scmp.lt.s32.totalorder %s168_s24, %s168_s24 }
  0xc9   :  { %p3135_p7 = scmp.ne.s32.totalorder %s168_s24, %s3134_s29  ;;  %p3140_p9 = scmp.lt.s32.totalorder %s3134_s29, %s3134_s29 }
  0xcb   :  { %p3141_p10 = por %p3140_p9, %p3139_p8 }
  0xcd   :  { %p3142_p11 = pnand %p3141_p10, %p3135_p7 }
  0xcf   :  { %3145 = shalt.err (!%p3142_p11)
}
  0xd0   :  { %170 = dma.hbm_to_vmem [thread:$0]  %s3571_s18, 64, %s168_s24, [#allocation20]  }
  0xd1   :  { %3146 = dma.done.wait [#allocation3], 16  }
  0xd2   :  { %3147 = vsyncadd [#allocation3], 4294967280 }
  0xd3   :  { %3148 = dma.done.wait [#allocation5], 32  }
  0xd4   :  { %3149 = vsyncadd [#allocation5], 4294967264 }
  0xd5   :  { %3150 = dma.done.wait [#allocation8], 2064  }
  0xd6   :  { %3151 = vsyncadd [#allocation8], 4294965232 }
  0xd7   :  { %3152 = dma.done.wait [#allocation11], 64  }
  0xd8   :  { %3153 = vsyncadd [#allocation11], 4294967232 }
  0xd9   :  { %3154 = dma.done.wait [#allocation14], 8224  }
  0xda   :  { %3155 = vsyncadd [#allocation14], 4294959072 }
  0xdb   :  { %3156 = dma.done.wait [#allocation17], 16448  }
  0xdc   :  { %3157 = vsyncadd [#allocation17], 4294950848 }
  0xdd   :  { %3158 = dma.done.wait [#allocation20], 64  }
  0xde   :  { %3159 = vsyncadd [#allocation20], 4294967232  ;;  %v3176_v0 = vmov 0.0   ;;  %vm3177_vm0 = vmmov 0   ;;  %v3178_v1 = vmov 0   ;;  %s3578_s28 = sld [smem:[#allocation30_spill]] }
  0xdf   :  { %2490 = vmatprep.subr.bf16.mxu1 %v3176_v0  ;;  %2494 = vmatprep.mubr.msk.bf16.mxu1 %vm3177_vm0, %v3176_v0  ;;  %s3579_s10 = sld [smem:[#allocation28_spill]]  ;;  %s3580_s23 = sld [smem:[#allocation29_spill]]  ;;  %v2544_v6 = vld [vmem:[%s3558_s5] sm:$0xff]   ;;  %vm240_vm1 = vcmask 261120   ;;  %v2545_v8 = vld [vmem:[%s3558_s5 + $0x8] sm:$0xff]   ;;  %v2546_v9 = vld [vmem:[%s3558_s5 + $0x10] sm:$0xff]  }
  0xe0   :  { %2541 = vset.pattern.permute.xlu0 %v3178_v1  ;;  %561 = vmatprep.mubr.bf16.mxu0 %v3178_v1  ;;  %v2547_v10 = vld [vmem:[%s3558_s5 + $0x18] sm:$0xff]   ;;  %s3581_s7 = sld [smem:[#allocation31_spill]]  ;;  %v2265_v15 = vld [vmem:[#allocation2] ss:$0 sm:$0xff]  ;;  %vm335_vm3 = vcmask 523264  }
  0xe1   :  { %v2548_v24 = vld [vmem:[#allocation9 + $0x4] ss:$8 sps:$4 sm:$0xff]   ;;  %v2550_v25 = vld [vmem:[#allocation9] ss:$8 sps:$4 sm:$0xff]   ;;  %v2551_v26 = vld [vmem:[#allocation9 + $0x14] ss:$8 sps:$4 sm:$0xff]  }
  0xe2   :  { %529 = vmatprep.subr.bf16.mxu0 %v2548_v24  ;;  %v2553_v27 = vld [vmem:[#allocation9 + $0x10] ss:$8 sps:$4 sm:$0xff]   ;;  %v2554_v28 = vld [vmem:[#allocation9 + $0x24] ss:$8 sps:$4 sm:$0xff]   ;;  %v2556_v29 = vld [vmem:[#allocation9 + $0x20] ss:$8 sps:$4 sm:$0xff]  }
  0xe3   :  { %530 = vmatpush1.bf16.msra.mxu0 %v2550_v25  ;;  %v2557_v30 = vld [vmem:[#allocation9 + $0x34] ss:$8 sps:$4 sm:$0xff]   ;;  %v2559_v31 = vld [vmem:[#allocation9 + $0x30] ss:$8 sps:$4 sm:$0xff]   ;;  %v2560_v32 = vld [vmem:[#allocation9 + $0x44] ss:$8 sps:$4 sm:$0xff]  }
  0xe4   :  { %v2542_v2 = vld [vmem:[%s3578_s28] sm:$0xff]   ;;  %v2543_v3 = vld [vmem:[%s3578_s28 + $0x8] sm:$0xff]   ;;  %531 = vmatprep.subr.bf16.mxu0 %v2551_v26 }
  0xe5   :  { %2491 = vmatpush3.bf16.msra.mxu1 %v2542_v2  ;;  %v208_v4 = vld [vmem:[%s3579_s10] sm:$0xff]  ;;  %v2562_v33 = vld [vmem:[#allocation9 + $0x40] ss:$8 sps:$4 sm:$0xff]   ;;  %v2566_v36 = vld [vmem:[#allocation9 + $0x64] ss:$8 sps:$4 sm:$0xff]  }
  0xe6   :  { %v209_v5 = vld [vmem:[%s3580_s23] sm:$0xff]  ;;  %2492 = vmatprep.subr.bf16.mxu1 %v3176_v0  ;;  %v210_v7 = vpack.c.bf16 %v208_v4, %v208_v4  ;;  %v2568_v37 = vld [vmem:[#allocation9 + $0x60] ss:$8 sps:$4 sm:$0xff]  }
  0xe7   :  { %218 = vperm.xlu0 %2541, %v209_v5   ;;  %v2261_v11 = vld [vmem:[%s3581_s7] ss:$0 sm:$0xff]  ;;  %532 = vmatpush1.bf16.msra.mxu0 %v2553_v27  ;;  %v2563_v34 = vld [vmem:[#allocation9 + $0x54] ss:$8 sps:$4 sm:$0xff]   ;;  %v2266_v51 = vld [vmem:[#allocation4] ss:$0 sm:$0xff] }
  0xe8   :  { %533 = vmatprep.subr.bf16.mxu0 %v2554_v28  ;;  %v2565_v35 = vld [vmem:[#allocation9 + $0x50] ss:$8 sps:$4 sm:$0xff]   ;;  %v2569_v38 = vld [vmem:[#allocation9 + $0x74] ss:$8 sps:$4 sm:$0xff]  }
  0xe9   :  { %2493 = vmatpush3.bf16.msra.mxu1 %v2543_v3  ;;  %v2571_v39 = vld [vmem:[#allocation9 + $0x70] ss:$8 sps:$4 sm:$0xff]  }
  0xea   :  { %2498 = vmatprep.subr.bf16.mxu1 %v3176_v0  ;;  %v2572_v40 = vld [vmem:[#allocation15] ss:$16 sps:$4 sm:$0xff]   ;;  %v2574_v41 = vld [vmem:[#allocation15 + $0x4] ss:$16 sps:$4 sm:$0xff]   ;;  %v2577_v42 = vld [vmem:[#allocation15 + $0xc] ss:$16 sps:$4 sm:$0xff]  }
  0xeb   :  { %534 = vmatpush1.bf16.msra.mxu0 %v2556_v29  ;;  %v2580_v43 = vld [vmem:[#allocation15 + $0x24] ss:$16 sps:$4 sm:$0xff]   ;;  %v2578_v44 = vld [vmem:[#allocation15 + $0x20] ss:$16 sps:$4 sm:$0xff]   ;;  %v2589_v24 = vld [vmem:[#allocation15 + $0x4c] ss:$16 sps:$4 sm:$0xff]  }
  0xec   :  { %2495 = vmatmul.mubr.msk.bf16.vlgmr.msra.gmra.mrb[0].mxu1 %vm240_vm1, %v210_v7  ;;  %535 = vmatprep.subr.bf16.mxu0 %v2557_v30  ;;  %v2586_v45 = vld [vmem:[#allocation15 + $0x44] ss:$16 sps:$4 sm:$0xff]   ;;  %v2584_v46 = vld [vmem:[#allocation15 + $0x40] ss:$16 sps:$4 sm:$0xff]   ;;  %v2587_v25 = vld [vmem:[#allocation15 + $0x48] ss:$16 sps:$4 sm:$0xff]  }
  0xed   :  { %2499 = vmatpush3.bf16.msra.mxu1 %v2544_v6  ;;  %2506 = vmatprep.mubr.msk.bf16.mxu1 %vm3177_vm0, %v3176_v0  ;;  %v2592_v47 = vld [vmem:[#allocation15 + $0x64] ss:$16 sps:$4 sm:$0xff]   ;;  %v2590_v48 = vld [vmem:[#allocation15 + $0x60] ss:$16 sps:$4 sm:$0xff]   ;;  %v2595_v26 = vld [vmem:[#allocation15 + $0x6c] ss:$16 sps:$4 sm:$0xff]  }
  0xee   :  { %2500 = vmatprep.subr.bf16.mxu1 %v3176_v0  ;;  %v2598_v49 = vld [vmem:[#allocation15 + $0x84] ss:$16 sps:$4 sm:$0xff]   ;;  %v2596_v50 = vld [vmem:[#allocation15 + $0x80] ss:$16 sps:$4 sm:$0xff]   ;;  %v2593_v27 = vld [vmem:[#allocation15 + $0x68] ss:$16 sps:$4 sm:$0xff]  }
  0xef   :  { %536 = vmatpush1.bf16.msra.mxu0 %v2559_v31  ;;  %v2601_v28 = vld [vmem:[#allocation15 + $0x8c] ss:$16 sps:$4 sm:$0xff]   ;;  %v2599_v29 = vld [vmem:[#allocation15 + $0x88] ss:$16 sps:$4 sm:$0xff]   ;;  %v2604_v30 = vld [vmem:[#allocation15 + $0xa4] ss:$16 sps:$4 sm:$0xff]  }
  0xf0   :  { %537 = vmatprep.subr.bf16.mxu0 %v2560_v32  ;;  %v2607_v31 = vld [vmem:[#allocation15 + $0xac] ss:$16 sps:$4 sm:$0xff]   ;;  %v2602_v32 = vld [vmem:[#allocation15 + $0xa0] ss:$16 sps:$4 sm:$0xff]  }
  0xf1   :  { %2501 = vmatpush3.bf16.msra.mxu1 %v2545_v8 }
  0xf2   :  { %2502 = vmatprep.subr.bf16.mxu1 %v3176_v0 }
  0xf3   :  { %538 = vmatpush1.bf16.msra.mxu0 %v2562_v33  ;;  %v2605_v33 = vld [vmem:[#allocation15 + $0xa8] ss:$16 sps:$4 sm:$0xff]  }
  0xf4   :  { %539 = vmatprep.subr.bf16.mxu0 %v2563_v34  ;;  %v2610_v34 = vld [vmem:[#allocation15 + $0xc4] ss:$16 sps:$4 sm:$0xff]  }
  0xf5   :  { %2503 = vmatpush3.bf16.msra.mxu1 %v2546_v9 }
  0xf6   :  { %2504 = vmatprep.subr.bf16.mxu1 %v3176_v0 }
  0xf7   :  { %540 = vmatpush1.bf16.msra.mxu0 %v2565_v35  ;;  %v2613_v35 = vld [vmem:[#allocation15 + $0xcc] ss:$16 sps:$4 sm:$0xff]  }
  0xf8   :  { %541 = vmatprep.subr.bf16.mxu0 %v2566_v36  ;;  %v2608_v36 = vld [vmem:[#allocation15 + $0xc0] ss:$16 sps:$4 sm:$0xff]  }
  0xf9   :  { %2505 = vmatpush3.bf16.msra.mxu1 %v2547_v10 }
  0xfa   :  { %1054 = vmatprep.subr.bf16.mxu1 %v2574_v41  ;;  %v2617_v41 = vld [vmem:[#allocation15 + $0xe8] ss:$16 sps:$4 sm:$0xff]  }
  0xfb   :  { %542 = vmatpush1.bf16.msra.mxu0 %v2568_v37  ;;  %v2611_v37 = vld [vmem:[#allocation15 + $0xc8] ss:$16 sps:$4 sm:$0xff]  }
  0xfc   :  { %543 = vmatprep.subr.bf16.mxu0 %v2569_v38  ;;  %v2616_v38 = vld [vmem:[#allocation15 + $0xe4] ss:$16 sps:$4 sm:$0xff]  }
  0xff   :  { %544 = vmatpush1.bf16.msra.mxu0 %v2571_v39  ;;  %v2619_v39 = vld [vmem:[#allocation15 + $0xec] ss:$16 sps:$4 sm:$0xff]  }
 0x100   :  { %1095 = vmatprep.subr.bf16.mxu0 %v2577_v42  ;;  %v2622_v42 = vld [vmem:[#allocation15 + $0x104] ss:$16 sps:$4 sm:$0xff]  }
 0x166   :  { %v219_v12 = vpop.permute.xlu0 %218 }
 0x167   :  { %v227_v13 = vmul.f32 %v2261_v11, %v219_v12 }
 0x1bf   :  { %v278_v14 = vpop.f32.mrb[0].mxu1 }
 0x1c0   :  { %v279_v16 = vadd.f32 %v278_v14, %v227_v13  ;;  %v2496_v17 = vpop.f32.mrb[1].mxu1  ;;  %v2272_v13 = vld [vmem:[#allocation6] ss:$0 sm:$0xff] }
 0x1c1   :  { %v281_v18 = vpop.f32.mrb[2].mxu1 }
 0x1c2   :  { %v291_v19 = vadd.f32 %v2265_v15, %v279_v16  ;;  %v2497_v20 = vpop.f32.mrb[3].mxu1  ;;  %v2273_v15 = vld [vmem:[#allocation7] ss:$0 sm:$0xff] }
 0x1c3   :  { %v2575_v20 = vld [vmem:[#allocation15 + $0x8] ss:$16 sps:$4 sm:$0xff]  }
 0x1c4   :  { %vm292_vm2 = vcmp.gt.f32.partialorder %v291_v19, 0.0  ;;  %v293_v21 = vmul.f32 0.2, %v291_v19 }
 0x1c6   :  { %v294_v22 = vsel %vm292_vm2, %v291_v19, %v293_v21 }
 0x1c7   :  { %v295_v23 = vpack.c.bf16 %v294_v22, %v294_v22  ;;  %v2583_v22 = vld [vmem:[#allocation15 + $0x2c] ss:$16 sps:$4 sm:$0xff]  }
 0x1c9   :  { %2507 = vmatmul.mubr.msk.bf16.vlgmr.msra.gmra.mrb[4].mxu1 %vm335_vm3, %v295_v23  ;;  %v2581_v23 = vld [vmem:[#allocation15 + $0x28] ss:$16 sps:$4 sm:$0xff]  }
 0x1ca   :  { %1055 = vmatpush1.bf16.msra.mxu1 %v2572_v40  ;;  %v2614_v40 = vld [vmem:[#allocation15 + $0xe0] ss:$16 sps:$4 sm:$0xff]  }
 0x1cb   :  { %1056 = vmatprep.subr.bf16.mxu1 %v2580_v43  ;;  %v2625_v43 = vld [vmem:[#allocation15 + $0x10c] ss:$16 sps:$4 sm:$0xff]  }
 0x1ce   :  { %1057 = vmatpush1.bf16.msra.mxu1 %v2578_v44  ;;  %v2620_v44 = vld [vmem:[#allocation15 + $0x100] ss:$16 sps:$4 sm:$0xff]  }
 0x1cf   :  { %1058 = vmatprep.subr.bf16.mxu1 %v2586_v45  ;;  %v2623_v45 = vld [vmem:[#allocation15 + $0x108] ss:$16 sps:$4 sm:$0xff]  }
 0x1d2   :  { %1059 = vmatpush1.bf16.msra.mxu1 %v2584_v46  ;;  %v2628_v46 = vld [vmem:[#allocation15 + $0x124] ss:$16 sps:$4 sm:$0xff]  }
 0x1d3   :  { %1060 = vmatprep.subr.bf16.mxu1 %v2592_v47  ;;  %v2631_v47 = vld [vmem:[#allocation15 + $0x12c] ss:$16 sps:$4 sm:$0xff]  }
 0x1d6   :  { %1061 = vmatpush1.bf16.msra.mxu1 %v2590_v48  ;;  %v2626_v48 = vld [vmem:[#allocation15 + $0x120] ss:$16 sps:$4 sm:$0xff]  }
 0x1d7   :  { %1062 = vmatprep.subr.bf16.mxu1 %v2598_v49  ;;  %v2629_v49 = vld [vmem:[#allocation15 + $0x128] ss:$16 sps:$4 sm:$0xff]  }
 0x1da   :  { %1063 = vmatpush1.bf16.msra.mxu1 %v2596_v50  ;;  %v2634_v50 = vld [vmem:[#allocation15 + $0x144] ss:$16 sps:$4 sm:$0xff]  }
 0x1db   :  { %1064 = vmatprep.subr.bf16.mxu1 %v2604_v30 }
 0x1de   :  { %1065 = vmatpush1.bf16.msra.mxu1 %v2602_v32 }
 0x1df   :  { %1066 = vmatprep.subr.bf16.mxu1 %v2610_v34 }
 0x1e2   :  { %1067 = vmatpush1.bf16.msra.mxu1 %v2608_v36 }
 0x1e3   :  { %1068 = vmatprep.subr.bf16.mxu1 %v2616_v38 }
 0x1e6   :  { %1069 = vmatpush1.bf16.msra.mxu1 %v2614_v40 }
 0x1e7   :  { %1070 = vmatprep.subr.bf16.mxu1 %v2622_v42 }
 0x1ea   :  { %1071 = vmatpush1.bf16.msra.mxu1 %v2620_v44 }
 0x1eb   :  { %1072 = vmatprep.subr.bf16.mxu1 %v2628_v46 }
 0x1ee   :  { %1073 = vmatpush1.bf16.msra.mxu1 %v2626_v48 }
 0x1ef   :  { %1074 = vmatprep.subr.bf16.mxu1 %v2634_v50 }
 0x29c   :  { %v373_v52 = vpop.f32.mrb[4].mxu1 }
 0x29d   :  { %v374_v53 = vadd.f32 %v2266_v51, %v373_v52  ;;  %v2508_v54 = vpop.f32.mrb[5].mxu1  ;;  %v2637_v51 = vld [vmem:[#allocation15 + $0x14c] ss:$16 sps:$4 sm:$0xff]   ;;  %v2632_v52 = vld [vmem:[#allocation15 + $0x140] ss:$16 sps:$4 sm:$0xff]  }
 0x29e   :  { %v376_v55 = vpop.f32.mrb[6].mxu1  ;;  %1075 = vmatpush1.bf16.msra.mxu1 %v2632_v52  ;;  %v2640_v54 = vld [vmem:[#allocation15 + $0x164] ss:$16 sps:$4 sm:$0xff]  }
 0x29f   :  { %v381_v56 = vrot.slane %v374_v53, 4  ;;  %v389_v57 = vmul.f32 %v374_v53, %v374_v53  ;;  %v2509_v58 = vpop.f32.mrb[7].mxu1  ;;  %v2643_v55 = vld [vmem:[#allocation15 + $0x16c] ss:$16 sps:$4 sm:$0xff]   ;;  %1076 = vmatprep.subr.bf16.mxu1 %v2640_v54 }
 0x2a0   :  { %v2646_v58 = vld [vmem:[#allocation15 + $0x184] ss:$16 sps:$4 sm:$0xff]  }
 0x2a1   :  { %v382_v59 = vadd.f32 %v381_v56, %v374_v53  ;;  %v390_v60 = vrot.slane %v389_v57, 4  ;;  %v2638_v56 = vld [vmem:[#allocation15 + $0x160] ss:$16 sps:$4 sm:$0xff]  }
 0x2a2   :  { %1077 = vmatpush1.bf16.msra.mxu1 %v2638_v56 }
 0x2a3   :  { %v383_v61 = vrot.slane %v382_v59, 2  ;;  %v391_v62 = vadd.f32 %v390_v60, %v389_v57  ;;  %v2641_v57 = vld [vmem:[#allocation15 + $0x168] ss:$16 sps:$4 sm:$0xff]   ;;  %v2644_v60 = vld [vmem:[#allocation15 + $0x180] ss:$16 sps:$4 sm:$0xff]   ;;  %1078 = vmatprep.subr.bf16.mxu1 %v2646_v58 }
 0x2a5   :  { %v384_v63 = vadd.f32 %v383_v61, %v382_v59  ;;  %v392_v0 = vrot.slane %v391_v62, 2  ;;  %v2649_v59 = vld [vmem:[#allocation15 + $0x18c] ss:$16 sps:$4 sm:$0xff]   ;;  %v2647_v61 = vld [vmem:[#allocation15 + $0x188] ss:$16 sps:$4 sm:$0xff]  }
 0x2a6   :  { %1079 = vmatpush1.bf16.msra.mxu1 %v2644_v60 }
 0x2a7   :  { %v385_v1 = vrot.slane %v384_v63, 1  ;;  %v393_v2 = vadd.f32 %v392_v0, %v391_v62  ;;  %v2652_v62 = vld [vmem:[#allocation15 + $0x1a4] ss:$16 sps:$4 sm:$0xff]   ;;  %v2650_v0 = vld [vmem:[#allocation15 + $0x1a0] ss:$16 sps:$4 sm:$0xff]  }
 0x2a8   :  { %1080 = vmatprep.subr.bf16.mxu1 %v2652_v62  ;;  %v571_v62 = vld [vmem:[#allocation13] sm:$0x3] }
 0x2a9   :  { %v386_v3 = vadd.f32 %v385_v1, %v384_v63  ;;  %v394_v4 = vrot.slane %v393_v2, 1  ;;  %v2655_v63 = vld [vmem:[#allocation15 + $0x1ac] ss:$16 sps:$4 sm:$0xff]   ;;  %v2653_v1 = vld [vmem:[#allocation15 + $0x1a8] ss:$16 sps:$4 sm:$0xff]  }
 0x2aa   :  { %1081 = vmatpush1.bf16.msra.mxu1 %v2650_v0 }
 0x2ab   :  { %v388_v5 = vmul.f32 0.125, %v386_v3  ;;  %v395_v6 = vadd.f32 %v394_v4, %v393_v2  ;;  %v2656_v2 = vld [vmem:[#allocation15 + $0x1c0] ss:$16 sps:$4 sm:$0xff]   ;;  %v2658_v3 = vld [vmem:[#allocation15 + $0x1c4] ss:$16 sps:$4 sm:$0xff]  }
 0x2ac   :  { %v2659_v4 = vld [vmem:[#allocation15 + $0x1c8] ss:$16 sps:$4 sm:$0xff]   ;;  %1082 = vmatprep.subr.bf16.mxu1 %v2658_v3 }
 0x2ad   :  { %v396_v7 = vmul.f32 0.125, %v395_v6  ;;  %v397_v8 = vmul.f32 %v388_v5, %v388_v5  ;;  %v399_v11 = vsub.f32 %v374_v53, %v388_v5  ;;  %v2635_v53 = vld [vmem:[#allocation15 + $0x148] ss:$16 sps:$4 sm:$0xff]   ;;  %v2661_v5 = vld [vmem:[#allocation15 + $0x1cc] ss:$16 sps:$4 sm:$0xff]  }
 0x2ae   :  { %v2664_v6 = vld [vmem:[#allocation15 + $0x1e4] ss:$16 sps:$4 sm:$0xff]   ;;  %1083 = vmatpush1.bf16.msra.mxu1 %v2656_v2 }
 0x2af   :  { %v398_v9 = vsub.f32 %v396_v7, %v397_v8  ;;  %v2667_v7 = vld [vmem:[#allocation15 + $0x1ec] ss:$16 sps:$4 sm:$0xff]   ;;  %v2662_v8 = vld [vmem:[#allocation15 + $0x1e0] ss:$16 sps:$4 sm:$0xff]   ;;  %1084 = vmatprep.subr.bf16.mxu1 %v2664_v6 }
 0x2b1   :  { %v400_v10 = vadd.f32 0.8, %v398_v9  ;;  %v2665_v9 = vld [vmem:[#allocation15 + $0x1e8] ss:$16 sps:$4 sm:$0xff]  }
 0x2b2   :  { %1085 = vmatpush1.bf16.msra.mxu1 %v2662_v8 }
 0x2b3   :  { %2860 = vrsqrt.f32 %v400_v10  ;;  %v2670_v10 = vld [vmem:[#allocation18 + $0x4] ss:$16 sps:$4 sm:$0xff]  }
 0x2b4   :  { %2078 = vmatprep.subr.bf16.mxu1 %v2670_v10 }
 0x2bd   :  { %v2861_v12 = vpop.eup %2860 }
 0x2be   :  { %v402_v14 = vmul.f32 %v2861_v12, %v399_v11  ;;  %v2673_v11 = vld [vmem:[#allocation18 + $0xc] ss:$16 sps:$4 sm:$0xff]   ;;  %v439_v12 = vlaneseq }
 0x2c0   :  { %v409_v16 = vmul.f32 %v2272_v13, %v402_v14  ;;  %v3466_v13 = vshrl.u32 %v439_v12, 7 }
 0x2c2   :  { %v416_v17 = vadd.f32 %v2273_v15, %v409_v16  ;;  %v3469_v14 = vsub.s32 0, %v3466_v13  ;;  %v437_v15 = vld [vmem:[#allocation10] sm:$0x3]  ;;  %v3472_v16 = vsub.s32 1, %v3466_v13 }
 0x2c4   :  { %vm417_vm4 = vcmp.gt.f32.partialorder %v416_v17, 0.0  ;;  %v418_v18 = vmul.f32 0.2, %v416_v17  ;;  %v631_v6 = vrot.slane %v571_v62, %v3469_v14  ;;  %v635_v8 = vrot.slane %v571_v62, %v3472_v16  ;;  %v2728_v62 = vld [vmem:[#allocation18 + $0x140] ss:$16 sps:$4 sm:$0xff]  }
 0x2c6   :  { %v419_v19 = vsel %vm417_vm4, %v416_v17, %v418_v18  ;;  %v442_v17 = vrot.slane %v437_v15, %v3469_v14  ;;  %v446_v18 = vrot.slane %v437_v15, %v3472_v16 }
 0x2c7   :  { %v420_v21 = vpack.c.bf16 %v419_v19, %v419_v19 }
 0x2c9   :  { %562 = vmatmul.mubr.bf16.vlgmr.msra.gmra.mrb[0].mxu0 %v420_v21 }
 0x2ca   :  { %1096 = vmatpush1.bf16.msra.mxu0 %v2575_v20 }
 0x2cb   :  { %1097 = vmatprep.subr.bf16.mxu0 %v2583_v22 }
 0x2ce   :  { %1098 = vmatpush1.bf16.msra.mxu0 %v2581_v23 }
 0x2cf   :  { %1099 = vmatprep.subr.bf16.mxu0 %v2589_v24 }
 0x2d2   :  { %1100 = vmatpush1.bf16.msra.mxu0 %v2587_v25 }
 0x2d3   :  { %1101 = vmatprep.subr.bf16.mxu0 %v2595_v26 }
 0x2d6   :  { %1102 = vmatpush1.bf16.msra.mxu0 %v2593_v27 }
 0x2d7   :  { %1103 = vmatprep.subr.bf16.mxu0 %v2601_v28 }
 0x2da   :  { %1104 = vmatpush1.bf16.msra.mxu0 %v2599_v29 }
 0x2db   :  { %1105 = vmatprep.subr.bf16.mxu0 %v2607_v31 }
 0x2de   :  { %1106 = vmatpush1.bf16.msra.mxu0 %v2605_v33 }
 0x2df   :  { %1107 = vmatprep.subr.bf16.mxu0 %v2613_v35 }
 0x2e2   :  { %1108 = vmatpush1.bf16.msra.mxu0 %v2611_v37 }
 0x2e3   :  { %1109 = vmatprep.subr.bf16.mxu0 %v2619_v39 }
 0x2e6   :  { %1110 = vmatpush1.bf16.msra.mxu0 %v2617_v41 }
 0x2e7   :  { %1111 = vmatprep.subr.bf16.mxu0 %v2625_v43 }
 0x2ea   :  { %1112 = vmatpush1.bf16.msra.mxu0 %v2623_v45 }
 0x2eb   :  { %1113 = vmatprep.subr.bf16.mxu0 %v2631_v47 }
 0x2ee   :  { %1114 = vmatpush1.bf16.msra.mxu0 %v2629_v49 }
 0x2ef   :  { %1115 = vmatprep.subr.bf16.mxu0 %v2637_v51 }
 0x2f2   :  { %1116 = vmatpush1.bf16.msra.mxu0 %v2635_v53 }
 0x2f3   :  { %1117 = vmatprep.subr.bf16.mxu0 %v2643_v55 }
 0x2f6   :  { %1118 = vmatpush1.bf16.msra.mxu0 %v2641_v57 }
 0x2f7   :  { %1119 = vmatprep.subr.bf16.mxu0 %v2649_v59 }
 0x2fa   :  { %1120 = vmatpush1.bf16.msra.mxu0 %v2647_v61  ;;  %v570_v61 = vld [vmem:[#allocation12] sm:$0x3] }
 0x2fb   :  { %1121 = vmatprep.subr.bf16.mxu0 %v2655_v63  ;;  %v618_v0 = vrot.slane %v570_v61, %v3469_v14  ;;  %v622_v3 = vrot.slane %v570_v61, %v3472_v16  ;;  %v2733_v61 = vld [vmem:[#allocation18 + $0x14c] ss:$16 sps:$4 sm:$0xff]  }
 0x2fe   :  { %1122 = vmatpush1.bf16.msra.mxu0 %v2653_v1 }
 0x2ff   :  { %1123 = vmatprep.subr.bf16.mxu0 %v2661_v5 }
 0x302   :  { %1124 = vmatpush1.bf16.msra.mxu0 %v2659_v4 }
 0x303   :  { %1125 = vmatprep.subr.bf16.mxu0 %v2667_v7 }
 0x306   :  { %1126 = vmatpush1.bf16.msra.mxu0 %v2665_v9 }
 0x307   :  { %2160 = vmatprep.subr.bf16.mxu0 %v2673_v11 }
 0x39c   :  { %v563_v19 = vpop.f32.mrb[0].mxu0 }
 0x39d   :  { %v564_v20 = vadd.f32 %v563_v19, %v442_v17  ;;  %v565_v21 = vpop.f32.mrb[1].mxu0 }
 0x39e   :  { %v566_v22 = vadd.f32 %v565_v21, %v446_v18  ;;  %v567_v23 = vpop.f32.mrb[2].mxu0  ;;  %v2668_v21 = vld [vmem:[#allocation18] ss:$16 sps:$4 sm:$0xff]  }
 0x39f   :  { %v572_v24 = vrot.slane %v564_v20, 4  ;;  %v586_v25 = vmul.f32 %v564_v20, %v564_v20  ;;  %v568_v26 = vpop.f32.mrb[3].mxu0 }
 0x3a0   :  { %v578_v27 = vrot.slane %v566_v22, 4  ;;  %v587_v28 = vmul.f32 %v566_v22, %v566_v22  ;;  %v2674_v26 = vld [vmem:[#allocation18 + $0x20] ss:$16 sps:$4 sm:$0xff]  }
 0x3a1   :  { %v573_v29 = vadd.f32 %v572_v24, %v564_v20  ;;  %v588_v30 = vrot.slane %v586_v25, 4  ;;  %v2676_v24 = vld [vmem:[#allocation18 + $0x24] ss:$16 sps:$4 sm:$0xff]  }
 0x3a2   :  { %v579_v31 = vadd.f32 %v578_v27, %v566_v22  ;;  %v594_v32 = vrot.slane %v587_v28, 4  ;;  %v2677_v27 = vld [vmem:[#allocation18 + $0x28] ss:$16 sps:$4 sm:$0xff]  }
 0x3a3   :  { %v574_v33 = vrot.slane %v573_v29, 2  ;;  %v589_v34 = vadd.f32 %v588_v30, %v586_v25  ;;  %v2679_v25 = vld [vmem:[#allocation18 + $0x2c] ss:$16 sps:$4 sm:$0xff]   ;;  %v2680_v30 = vld [vmem:[#allocation18 + $0x40] ss:$16 sps:$4 sm:$0xff]  }
 0x3a4   :  { %v580_v35 = vrot.slane %v579_v31, 2  ;;  %v595_v36 = vadd.f32 %v594_v32, %v587_v28  ;;  %v2682_v28 = vld [vmem:[#allocation18 + $0x44] ss:$16 sps:$4 sm:$0xff]  }
 0x3a5   :  { %v575_v37 = vadd.f32 %v574_v33, %v573_v29  ;;  %v590_v38 = vrot.slane %v589_v34, 2  ;;  %v2685_v29 = vld [vmem:[#allocation18 + $0x4c] ss:$16 sps:$4 sm:$0xff]   ;;  %v2688_v32 = vld [vmem:[#allocation18 + $0x64] ss:$16 sps:$4 sm:$0xff]  }
 0x3a6   :  { %v581_v39 = vadd.f32 %v580_v35, %v579_v31  ;;  %v596_v40 = vrot.slane %v595_v36, 2  ;;  %v2683_v31 = vld [vmem:[#allocation18 + $0x48] ss:$16 sps:$4 sm:$0xff]   ;;  %v2691_v33 = vld [vmem:[#allocation18 + $0x6c] ss:$16 sps:$4 sm:$0xff]  }
 0x3a7   :  { %v576_v41 = vrot.slane %v575_v37, 1  ;;  %v591_v42 = vadd.f32 %v590_v38, %v589_v34  ;;  %v2686_v34 = vld [vmem:[#allocation18 + $0x60] ss:$16 sps:$4 sm:$0xff]   ;;  %v2689_v35 = vld [vmem:[#allocation18 + $0x68] ss:$16 sps:$4 sm:$0xff]  }
 0x3a8   :  { %v582_v43 = vrot.slane %v581_v39, 1  ;;  %v597_v44 = vadd.f32 %v596_v40, %v595_v36  ;;  %v2694_v36 = vld [vmem:[#allocation18 + $0x84] ss:$16 sps:$4 sm:$0xff]   ;;  %v2692_v38 = vld [vmem:[#allocation18 + $0x80] ss:$16 sps:$4 sm:$0xff]  }
 0x3a9   :  { %v577_v45 = vadd.f32 %v576_v41, %v575_v37  ;;  %v592_v46 = vrot.slane %v591_v42, 1  ;;  %v2697_v37 = vld [vmem:[#allocation18 + $0x8c] ss:$16 sps:$4 sm:$0xff]   ;;  %v2700_v40 = vld [vmem:[#allocation18 + $0xa4] ss:$16 sps:$4 sm:$0xff]  }
 0x3aa   :  { %v583_v47 = vadd.f32 %v582_v43, %v581_v39  ;;  %v598_v48 = vrot.slane %v597_v44, 1  ;;  %v2695_v39 = vld [vmem:[#allocation18 + $0x88] ss:$16 sps:$4 sm:$0xff]   ;;  %v2703_v41 = vld [vmem:[#allocation18 + $0xac] ss:$16 sps:$4 sm:$0xff]  }
 0x3ab   :  { %v584_v49 = vmul.f32 0.125, %v577_v45  ;;  %v593_v50 = vadd.f32 %v592_v46, %v591_v42  ;;  %v2698_v42 = vld [vmem:[#allocation18 + $0xa0] ss:$16 sps:$4 sm:$0xff]   ;;  %v2701_v43 = vld [vmem:[#allocation18 + $0xa8] ss:$16 sps:$4 sm:$0xff]  }
 0x3ac   :  { %v585_v51 = vmul.f32 0.125, %v583_v47  ;;  %v599_v52 = vadd.f32 %v598_v48, %v597_v44  ;;  %v2706_v44 = vld [vmem:[#allocation18 + $0xc4] ss:$16 sps:$4 sm:$0xff]   ;;  %v2709_v45 = vld [vmem:[#allocation18 + $0xcc] ss:$16 sps:$4 sm:$0xff]  }
 0x3ad   :  { %v600_v53 = vmul.f32 0.125, %v593_v50  ;;  %v602_v54 = vmul.f32 %v584_v49, %v584_v49  ;;  %v606_v63 = vsub.f32 %v564_v20, %v584_v49  ;;  %v2704_v46 = vld [vmem:[#allocation18 + $0xc0] ss:$16 sps:$4 sm:$0xff]   ;;  %v2707_v47 = vld [vmem:[#allocation18 + $0xc8] ss:$16 sps:$4 sm:$0xff]  }
 0x3ae   :  { %v601_v55 = vmul.f32 0.125, %v599_v52  ;;  %v603_v56 = vmul.f32 %v585_v51, %v585_v51  ;;  %v607_v2 = vsub.f32 %v566_v22, %v585_v51  ;;  %v2671_v22 = vld [vmem:[#allocation18 + $0x8] ss:$16 sps:$4 sm:$0xff]   ;;  %v2712_v48 = vld [vmem:[#allocation18 + $0xe4] ss:$16 sps:$4 sm:$0xff]  }
 0x3af   :  { %v604_v57 = vsub.f32 %v600_v53, %v602_v54  ;;  %v2715_v49 = vld [vmem:[#allocation18 + $0xec] ss:$16 sps:$4 sm:$0xff]   ;;  %v2710_v50 = vld [vmem:[#allocation18 + $0xe0] ss:$16 sps:$4 sm:$0xff]   ;;  %v2713_v51 = vld [vmem:[#allocation18 + $0xe8] ss:$16 sps:$4 sm:$0xff]  }
 0x3b0   :  { %v605_v58 = vsub.f32 %v601_v55, %v603_v56  ;;  %v2718_v52 = vld [vmem:[#allocation18 + $0x104] ss:$16 sps:$4 sm:$0xff]   ;;  %v2721_v53 = vld [vmem:[#allocation18 + $0x10c] ss:$16 sps:$4 sm:$0xff]   ;;  %v2716_v54 = vld [vmem:[#allocation18 + $0x100] ss:$16 sps:$4 sm:$0xff]  }
 0x3b1   :  { %v608_v59 = vadd.f32 0.8, %v604_v57  ;;  %v2719_v55 = vld [vmem:[#allocation18 + $0x108] ss:$16 sps:$4 sm:$0xff]   ;;  %v2724_v56 = vld [vmem:[#allocation18 + $0x124] ss:$16 sps:$4 sm:$0xff]  }
 0x3b2   :  { %v609_v60 = vadd.f32 0.8, %v605_v58  ;;  %v2727_v57 = vld [vmem:[#allocation18 + $0x12c] ss:$16 sps:$4 sm:$0xff]   ;;  %v2722_v58 = vld [vmem:[#allocation18 + $0x120] ss:$16 sps:$4 sm:$0xff]  }
 0x3b3   :  { %2862 = vrsqrt.f32 %v608_v59  ;;  %v2725_v59 = vld [vmem:[#allocation18 + $0x128] ss:$16 sps:$4 sm:$0xff]  }
 0x3b4   :  { %2864 = vrsqrt.f32 %v609_v60  ;;  %v2730_v60 = vld [vmem:[#allocation18 + $0x144] ss:$16 sps:$4 sm:$0xff]  }
 0x3bd   :  { %v2863_v1 = vpop.eup %2862 }
 0x3be   :  { %v2865_v4 = vpop.eup %2864  ;;  %v612_v5 = vmul.f32 %v2863_v1, %v606_v63  ;;  %v2731_v63 = vld [vmem:[#allocation18 + $0x148] ss:$16 sps:$4 sm:$0xff]   ;;  %v2739_v1 = vld [vmem:[#allocation18 + $0x16c] ss:$16 sps:$4 sm:$0xff]  }
 0x3bf   :  { %v613_v7 = vmul.f32 %v2865_v4, %v607_v2  ;;  %v2734_v2 = vld [vmem:[#allocation18 + $0x160] ss:$16 sps:$4 sm:$0xff]   ;;  %v2742_v4 = vld [vmem:[#allocation18 + $0x184] ss:$16 sps:$4 sm:$0xff]  }
 0x3c0   :  { %v625_v9 = vmul.f32 %v618_v0, %v612_v5  ;;  %v2736_v0 = vld [vmem:[#allocation18 + $0x164] ss:$16 sps:$4 sm:$0xff]   ;;  %v2745_v5 = vld [vmem:[#allocation18 + $0x18c] ss:$16 sps:$4 sm:$0xff]  }
 0x3c1   :  { %v626_v10 = vmul.f32 %v622_v3, %v613_v7  ;;  %v2737_v3 = vld [vmem:[#allocation18 + $0x168] ss:$16 sps:$4 sm:$0xff]  }
 0x3c2   :  { %v638_v11 = vadd.f32 %v631_v6, %v625_v9  ;;  %v2740_v6 = vld [vmem:[#allocation18 + $0x180] ss:$16 sps:$4 sm:$0xff]   ;;  %v2743_v7 = vld [vmem:[#allocation18 + $0x188] ss:$16 sps:$4 sm:$0xff]   ;;  %v2751_v9 = vld [vmem:[#allocation18 + $0x1ac] ss:$16 sps:$4 sm:$0xff]  }
 0x3c3   :  { %v639_v12 = vadd.f32 %v635_v8, %v626_v10  ;;  %v2748_v8 = vld [vmem:[#allocation18 + $0x1a4] ss:$16 sps:$4 sm:$0xff]   ;;  %v2746_v10 = vld [vmem:[#allocation18 + $0x1a0] ss:$16 sps:$4 sm:$0xff]  }
 0x3c4   :  { %vm640_vm5 = vcmp.gt.f32.partialorder %v638_v11, 0.0  ;;  %v642_v15 = vmul.f32 0.2, %v638_v11 }
 0x3c5   :  { %vm641_vm6 = vcmp.gt.f32.partialorder %v639_v12, 0.0  ;;  %v643_v17 = vmul.f32 0.2, %v639_v12 }
 0x3c6   :  { %v644_v18 = vsel %vm640_vm5, %v638_v11, %v642_v15  ;;  %v2749_v11 = vld [vmem:[#allocation18 + $0x1a8] ss:$16 sps:$4 sm:$0xff]   ;;  %v2754_v15 = vld [vmem:[#allocation18 + $0x1c4] ss:$16 sps:$4 sm:$0xff]  }
 0x3c7   :  { %v645_v19 = vsel %vm641_vm6, %v639_v12, %v643_v17  ;;  %v646_v23 = vpack.c.bf16 %v644_v18, %v644_v18  ;;  %v2752_v12 = vld [vmem:[#allocation18 + $0x1c0] ss:$16 sps:$4 sm:$0xff]   ;;  %v2755_v17 = vld [vmem:[#allocation18 + $0x1c8] ss:$16 sps:$4 sm:$0xff]   ;;  %v2757_v18 = vld [vmem:[#allocation18 + $0x1cc] ss:$16 sps:$4 sm:$0xff]  }
 0x3c8   :  { %v647_v20 = vpack.c.bf16 %v645_v19, %v645_v19  ;;  %v2760_v19 = vld [vmem:[#allocation18 + $0x1e4] ss:$16 sps:$4 sm:$0xff]  }
 0x3ca   :  { %1086 = vmatprep.mubr.bf16.mxu1 %v647_v20  ;;  %1127 = vmatprep.mubr.bf16.mxu0 %v647_v20  ;;  %v2763_v20 = vld [vmem:[#allocation18 + $0x1ec] ss:$16 sps:$4 sm:$0xff]  }
 0x3cb   :  { %1087 = vmatmul.mubr.bf16.vlgmr.msra.gmra.mrb[8].mxu1 %v646_v23  ;;  %1128 = vmatmul.mubr.bf16.vlgmr.msra.gmra.mrb[4].mxu0 %v646_v23  ;;  %v2766_v23 = vld [vmem:[#allocation18 + $0x204] ss:$16 sps:$4 sm:$0xff]  }
 0x3cc   :  { %2079 = vmatpush1.bf16.msra.mxu1 %v2668_v21  ;;  %2161 = vmatpush1.bf16.msra.mxu0 %v2671_v22  ;;  %v2758_v21 = vld [vmem:[#allocation18 + $0x1e0] ss:$16 sps:$4 sm:$0xff]   ;;  %v2761_v22 = vld [vmem:[#allocation18 + $0x1e8] ss:$16 sps:$4 sm:$0xff]  }
 0x3cd   :  { %2080 = vmatprep.subr.bf16.mxu1 %v2676_v24  ;;  %2162 = vmatprep.subr.bf16.mxu0 %v2679_v25  ;;  %v2769_v24 = vld [vmem:[#allocation18 + $0x20c] ss:$16 sps:$4 sm:$0xff]   ;;  %v3481_v25 = vsub.s32 2, %v3466_v13 }
 0x3d0   :  { %2081 = vmatpush1.bf16.msra.mxu1 %v2674_v26  ;;  %2163 = vmatpush1.bf16.msra.mxu0 %v2677_v27  ;;  %v712_v26 = vld [vmem:[%s3567_s14] sm:$0xf]  ;;  %v3487_v27 = vsub.s32 3, %v3466_v13 }
 0x3d1   :  { %2082 = vmatprep.subr.bf16.mxu1 %v2682_v28  ;;  %2164 = vmatprep.subr.bf16.mxu0 %v2685_v29  ;;  %v717_v28 = vrot.slane %v712_v26, %v3469_v14  ;;  %v725_v29 = vrot.slane %v712_v26, %v3481_v25 }
 0x3d4   :  { %2083 = vmatpush1.bf16.msra.mxu1 %v2680_v30  ;;  %2165 = vmatpush1.bf16.msra.mxu0 %v2683_v31  ;;  %v721_v30 = vrot.slane %v712_v26, %v3472_v16  ;;  %v729_v31 = vrot.slane %v712_v26, %v3487_v27 }
 0x3d5   :  { %2084 = vmatprep.subr.bf16.mxu1 %v2688_v32  ;;  %2166 = vmatprep.subr.bf16.mxu0 %v2691_v33 }
 0x3d8   :  { %2085 = vmatpush1.bf16.msra.mxu1 %v2686_v34  ;;  %2167 = vmatpush1.bf16.msra.mxu0 %v2689_v35 }
 0x3d9   :  { %2086 = vmatprep.subr.bf16.mxu1 %v2694_v36  ;;  %2168 = vmatprep.subr.bf16.mxu0 %v2697_v37 }
 0x3dc   :  { %2087 = vmatpush1.bf16.msra.mxu1 %v2692_v38  ;;  %2169 = vmatpush1.bf16.msra.mxu0 %v2695_v39 }
 0x3dd   :  { %2088 = vmatprep.subr.bf16.mxu1 %v2700_v40  ;;  %2170 = vmatprep.subr.bf16.mxu0 %v2703_v41 }
 0x3e0   :  { %2089 = vmatpush1.bf16.msra.mxu1 %v2698_v42  ;;  %2171 = vmatpush1.bf16.msra.mxu0 %v2701_v43 }
 0x3e1   :  { %2090 = vmatprep.subr.bf16.mxu1 %v2706_v44  ;;  %2172 = vmatprep.subr.bf16.mxu0 %v2709_v45 }
 0x3e4   :  { %2091 = vmatpush1.bf16.msra.mxu1 %v2704_v46  ;;  %2173 = vmatpush1.bf16.msra.mxu0 %v2707_v47 }
 0x3e5   :  { %2092 = vmatprep.subr.bf16.mxu1 %v2712_v48  ;;  %2174 = vmatprep.subr.bf16.mxu0 %v2715_v49 }
 0x3e8   :  { %2093 = vmatpush1.bf16.msra.mxu1 %v2710_v50  ;;  %2175 = vmatpush1.bf16.msra.mxu0 %v2713_v51 }
 0x3e9   :  { %2094 = vmatprep.subr.bf16.mxu1 %v2718_v52  ;;  %2176 = vmatprep.subr.bf16.mxu0 %v2721_v53 }
 0x3ec   :  { %2095 = vmatpush1.bf16.msra.mxu1 %v2716_v54  ;;  %2177 = vmatpush1.bf16.msra.mxu0 %v2719_v55 }
 0x3ed   :  { %2096 = vmatprep.subr.bf16.mxu1 %v2724_v56  ;;  %2178 = vmatprep.subr.bf16.mxu0 %v2727_v57 }
 0x3f0   :  { %2097 = vmatpush1.bf16.msra.mxu1 %v2722_v58  ;;  %2179 = vmatpush1.bf16.msra.mxu0 %v2725_v59 }
 0x3f1   :  { %2098 = vmatprep.subr.bf16.mxu1 %v2730_v60  ;;  %2180 = vmatprep.subr.bf16.mxu0 %v2733_v61 }
 0x3f4   :  { %2099 = vmatpush1.bf16.msra.mxu1 %v2728_v62  ;;  %2181 = vmatpush1.bf16.msra.mxu0 %v2731_v63 }
 0x3f5   :  { %2100 = vmatprep.subr.bf16.mxu1 %v2736_v0  ;;  %2182 = vmatprep.subr.bf16.mxu0 %v2739_v1 }
 0x3f8   :  { %2101 = vmatpush1.bf16.msra.mxu1 %v2734_v2  ;;  %2183 = vmatpush1.bf16.msra.mxu0 %v2737_v3 }
 0x3f9   :  { %2102 = vmatprep.subr.bf16.mxu1 %v2742_v4  ;;  %2184 = vmatprep.subr.bf16.mxu0 %v2745_v5 }
 0x3fc   :  { %2103 = vmatpush1.bf16.msra.mxu1 %v2740_v6  ;;  %2185 = vmatpush1.bf16.msra.mxu0 %v2743_v7 }
 0x3fd   :  { %2104 = vmatprep.subr.bf16.mxu1 %v2748_v8  ;;  %2186 = vmatprep.subr.bf16.mxu0 %v2751_v9 }
 0x400   :  { %2105 = vmatpush1.bf16.msra.mxu1 %v2746_v10  ;;  %2187 = vmatpush1.bf16.msra.mxu0 %v2749_v11 }
 0x401   :  { %2106 = vmatprep.subr.bf16.mxu1 %v2754_v15  ;;  %2188 = vmatprep.subr.bf16.mxu0 %v2757_v18 }
 0x404   :  { %2107 = vmatpush1.bf16.msra.mxu1 %v2752_v12  ;;  %2189 = vmatpush1.bf16.msra.mxu0 %v2755_v17 }
 0x405   :  { %2108 = vmatprep.subr.bf16.mxu1 %v2760_v19  ;;  %2190 = vmatprep.subr.bf16.mxu0 %v2763_v20 }
 0x408   :  { %2109 = vmatpush1.bf16.msra.mxu1 %v2758_v21  ;;  %2191 = vmatpush1.bf16.msra.mxu0 %v2761_v22 }
 0x409   :  { %2119 = vmatprep.subr.bf16.mxu1 %v2766_v23  ;;  %2201 = vmatprep.subr.bf16.mxu0 %v2769_v24 }
 0x49e   :  { %v1088_v32 = vpop.f32.mrb[8].mxu1  ;;  %v1129_v33 = vpop.f32.mrb[4].mxu0 }
 0x49f   :  { %v3493_v34 = vadd.f32 %v1088_v32, %v717_v28  ;;  %v3495_v35 = vadd.f32 %v1129_v33, %v725_v29  ;;  %v1090_v36 = vpop.f32.mrb[9].mxu1  ;;  %v1131_v37 = vpop.f32.mrb[5].mxu0 }
 0x4a0   :  { %v3497_v38 = vadd.f32 %v1090_v36, %v721_v30  ;;  %v3499_v13 = vadd.f32 %v1131_v37, %v729_v31  ;;  %v1092_v39 = vpop.f32.mrb[10].mxu1  ;;  %v1133_v40 = vpop.f32.mrb[6].mxu0 }
 0x4a1   :  { %v1138_v41 = vrot.slane %v3493_v34, 4  ;;  %v1166_v42 = vmul.f32 %v3493_v34, %v3493_v34  ;;  %v1150_v43 = vrot.slane %v3495_v35, 4  ;;  %v1168_v44 = vmul.f32 %v3495_v35, %v3495_v35  ;;  %v1093_v45 = vpop.f32.mrb[11].mxu1  ;;  %v1134_v46 = vpop.f32.mrb[7].mxu0 }
 0x4a2   :  { %v1144_v47 = vrot.slane %v3497_v38, 4  ;;  %v1167_v48 = vmul.f32 %v3497_v38, %v3497_v38  ;;  %v1156_v49 = vrot.slane %v3499_v13, 4  ;;  %v1169_v50 = vmul.f32 %v3499_v13, %v3499_v13 }
 0x4a3   :  { %v1139_v51 = vadd.f32 %v1138_v41, %v3493_v34  ;;  %v1170_v52 = vrot.slane %v1166_v42, 4  ;;  %v1151_v53 = vadd.f32 %v1150_v43, %v3495_v35  ;;  %v1182_v54 = vrot.slane %v1168_v44, 4 }
 0x4a4   :  { %v1145_v55 = vadd.f32 %v1144_v47, %v3497_v38  ;;  %v1176_v56 = vrot.slane %v1167_v48, 4  ;;  %v1157_v57 = vadd.f32 %v1156_v49, %v3499_v13  ;;  %v1188_v58 = vrot.slane %v1169_v50, 4 }
 0x4a5   :  { %v1140_v59 = vrot.slane %v1139_v51, 2  ;;  %v1171_v60 = vadd.f32 %v1170_v52, %v1166_v42  ;;  %v1152_v61 = vrot.slane %v1151_v53, 2  ;;  %v1183_v62 = vadd.f32 %v1182_v54, %v1168_v44 }
 0x4a6   :  { %v1146_v63 = vrot.slane %v1145_v55, 2  ;;  %v1177_v0 = vadd.f32 %v1176_v56, %v1167_v48  ;;  %v1158_v1 = vrot.slane %v1157_v57, 2  ;;  %v1189_v2 = vadd.f32 %v1188_v58, %v1169_v50 }
 0x4a7   :  { %v1141_v3 = vadd.f32 %v1140_v59, %v1139_v51  ;;  %v1172_v4 = vrot.slane %v1171_v60, 2  ;;  %v1153_v5 = vadd.f32 %v1152_v61, %v1151_v53  ;;  %v1184_v6 = vrot.slane %v1183_v62, 2  ;;  %v1136_v59 = vld [vmem:[%s3568_s15] sm:$0xf] }
 0x4a8   :  { %v1147_v7 = vadd.f32 %v1146_v63, %v1145_v55  ;;  %v1178_v8 = vrot.slane %v1177_v0, 2  ;;  %v1159_v9 = vadd.f32 %v1158_v1, %v1157_v57  ;;  %v1190_v10 = vrot.slane %v1189_v2, 2 }
 0x4a9   :  { %v1142_v11 = vrot.slane %v1141_v3, 1  ;;  %v1173_v12 = vadd.f32 %v1172_v4, %v1171_v60  ;;  %v1154_v15 = vrot.slane %v1153_v5, 1  ;;  %v1185_v17 = vadd.f32 %v1184_v6, %v1183_v62  ;;  %v1137_v60 = vld [vmem:[#allocation16] sm:$0xf] }
 0x4aa   :  { %v1148_v18 = vrot.slane %v1147_v7, 1  ;;  %v1179_v19 = vadd.f32 %v1178_v8, %v1177_v0  ;;  %v1160_v20 = vrot.slane %v1159_v9, 1  ;;  %v1191_v21 = vadd.f32 %v1190_v10, %v1189_v2 }
 0x4ab   :  { %v1143_v22 = vadd.f32 %v1142_v11, %v1141_v3  ;;  %v1174_v23 = vrot.slane %v1173_v12, 1  ;;  %v1155_v24 = vadd.f32 %v1154_v15, %v1153_v5  ;;  %v1186_v26 = vrot.slane %v1185_v17, 1 }
 0x4ac   :  { %v1149_v28 = vadd.f32 %v1148_v18, %v1147_v7  ;;  %v1180_v29 = vrot.slane %v1179_v19, 1  ;;  %v1161_v30 = vadd.f32 %v1160_v20, %v1159_v9  ;;  %v1192_v31 = vrot.slane %v1191_v21, 1 }
 0x4ad   :  { %v1162_v32 = vmul.f32 0.125, %v1143_v22  ;;  %v1175_v33 = vadd.f32 %v1174_v23, %v1173_v12  ;;  %v1164_v36 = vmul.f32 0.125, %v1155_v24  ;;  %v1187_v37 = vadd.f32 %v1186_v26, %v1185_v17 }
 0x4ae   :  { %v1163_v39 = vmul.f32 0.125, %v1149_v28  ;;  %v1181_v40 = vadd.f32 %v1180_v29, %v1179_v19  ;;  %v1165_v41 = vmul.f32 0.125, %v1161_v30  ;;  %v1193_v42 = vadd.f32 %v1192_v31, %v1191_v21 }
 0x4af   :  { %v1194_v43 = vmul.f32 0.125, %v1175_v33  ;;  %v1198_v44 = vmul.f32 %v1162_v32, %v1162_v32  ;;  %v1196_v45 = vmul.f32 0.125, %v1187_v37  ;;  %v1200_v46 = vmul.f32 %v1164_v36, %v1164_v36  ;;  %v2767_v33 = vld [vmem:[#allocation18 + $0x208] ss:$16 sps:$4 sm:$0xff]  }
 0x4b0   :  { %v1195_v47 = vmul.f32 0.125, %v1181_v40  ;;  %v1199_v48 = vmul.f32 %v1163_v39, %v1163_v39  ;;  %v1197_v50 = vmul.f32 0.125, %v1193_v42  ;;  %v1201_v51 = vmul.f32 %v1165_v41, %v1165_v41  ;;  %v2775_v40 = vld [vmem:[#allocation18 + $0x22c] ss:$16 sps:$4 sm:$0xff]   ;;  %v2770_v42 = vld [vmem:[#allocation18 + $0x220] ss:$16 sps:$4 sm:$0xff]  }
 0x4b1   :  { %v1202_v49 = vsub.f32 %v1194_v43, %v1198_v44  ;;  %v1204_v52 = vsub.f32 %v1196_v45, %v1200_v46  ;;  %v1206_v61 = vsub.f32 %v3493_v34, %v1162_v32  ;;  %v1226_v62 = vrot.slane %v1136_v59, %v3469_v14  ;;  %v2764_v32 = vld [vmem:[#allocation18 + $0x200] ss:$16 sps:$4 sm:$0xff]   ;;  %v2773_v43 = vld [vmem:[#allocation18 + $0x228] ss:$16 sps:$4 sm:$0xff]   ;;  %v2778_v44 = vld [vmem:[#allocation18 + $0x244] ss:$16 sps:$4 sm:$0xff]  }
 0x4b2   :  { %v1203_v53 = vsub.f32 %v1195_v47, %v1199_v48  ;;  %v1205_v55 = vsub.f32 %v1197_v50, %v1201_v51  ;;  %v1208_v0 = vsub.f32 %v3495_v35, %v1164_v36  ;;  %v1234_v1 = vrot.slane %v1136_v59, %v3481_v25  ;;  %v2781_v45 = vld [vmem:[#allocation18 + $0x24c] ss:$16 sps:$4 sm:$0xff]   ;;  %v2776_v46 = vld [vmem:[#allocation18 + $0x240] ss:$16 sps:$4 sm:$0xff]   ;;  %v2779_v47 = vld [vmem:[#allocation18 + $0x248] ss:$16 sps:$4 sm:$0xff]  }
 0x4b3   :  { %v1210_v54 = vadd.f32 0.8, %v1202_v49  ;;  %v1212_v56 = vadd.f32 0.8, %v1204_v52  ;;  %v1207_v4 = vsub.f32 %v3497_v38, %v1163_v39  ;;  %v1230_v5 = vrot.slane %v1136_v59, %v3472_v16  ;;  %v2772_v39 = vld [vmem:[#allocation18 + $0x224] ss:$16 sps:$4 sm:$0xff]  }
 0x4b4   :  { %v1211_v57 = vadd.f32 0.8, %v1203_v53  ;;  %v1213_v58 = vadd.f32 0.8, %v1205_v55  ;;  %v1251_v6 = vrot.slane %v1137_v60, %v3469_v14  ;;  %v1209_v9 = vsub.f32 %v3499_v13, %v1165_v41  ;;  %v2784_v48 = vld [vmem:[#allocation18 + $0x264] ss:$16 sps:$4 sm:$0xff]  }
 0x4b5   :  { %2866 = vrsqrt.f32 %v1210_v54  ;;  %v1238_v34 = vrot.slane %v1136_v59, %v3487_v27  ;;  %v1259_v10 = vrot.slane %v1137_v60, %v3481_v25  ;;  %v1255_v15 = vrot.slane %v1137_v60, %v3472_v16  ;;  %v2787_v49 = vld [vmem:[#allocation18 + $0x26c] ss:$16 sps:$4 sm:$0xff]   ;;  %v2782_v50 = vld [vmem:[#allocation18 + $0x260] ss:$16 sps:$4 sm:$0xff]   ;;  %v2785_v51 = vld [vmem:[#allocation18 + $0x268] ss:$16 sps:$4 sm:$0xff]  }
 0x4b6   :  { %2868 = vrsqrt.f32 %v1212_v56  ;;  %v1263_v38 = vrot.slane %v1137_v60, %v3487_v27  ;;  %v2790_v52 = vld [vmem:[#allocation18 + $0x284] ss:$16 sps:$4 sm:$0xff]   ;;  %v2793_v53 = vld [vmem:[#allocation18 + $0x28c] ss:$16 sps:$4 sm:$0xff]   ;;  %v2788_v54 = vld [vmem:[#allocation18 + $0x280] ss:$16 sps:$4 sm:$0xff]  }
 0x4b7   :  { %2870 = vrsqrt.f32 %v1211_v57  ;;  %v2791_v55 = vld [vmem:[#allocation18 + $0x288] ss:$16 sps:$4 sm:$0xff]   ;;  %v2796_v56 = vld [vmem:[#allocation18 + $0x2a4] ss:$16 sps:$4 sm:$0xff]   ;;  %v2799_v57 = vld [vmem:[#allocation18 + $0x2ac] ss:$16 sps:$4 sm:$0xff]  }
 0x4b8   :  { %2872 = vrsqrt.f32 %v1213_v58  ;;  %v2794_v58 = vld [vmem:[#allocation18 + $0x2a0] ss:$16 sps:$4 sm:$0xff]   ;;  %v2797_v59 = vld [vmem:[#allocation18 + $0x2a8] ss:$16 sps:$4 sm:$0xff]   ;;  %v2802_v60 = vld [vmem:[#allocation18 + $0x2c4] ss:$16 sps:$4 sm:$0xff]  }
 0x4bf   :  { %v2867_v63 = vpop.eup %2866 }
 0x4c0   :  { %v2869_v2 = vpop.eup %2868  ;;  %v1218_v3 = vmul.f32 %v2867_v63, %v1206_v61  ;;  %v2805_v61 = vld [vmem:[#allocation18 + $0x2cc] ss:$16 sps:$4 sm:$0xff]   ;;  %v2803_v63 = vld [vmem:[#allocation18 + $0x2c8] ss:$16 sps:$4 sm:$0xff]  }
 0x4c1   :  { %v2871_v7 = vpop.eup %2870  ;;  %v1220_v8 = vmul.f32 %v2869_v2, %v1208_v0  ;;  %v2808_v0 = vld [vmem:[#allocation18 + $0x2e4] ss:$16 sps:$4 sm:$0xff]   ;;  %v2806_v2 = vld [vmem:[#allocation18 + $0x2e0] ss:$16 sps:$4 sm:$0xff]  }
 0x4c2   :  { %v2873_v11 = vpop.eup %2872  ;;  %v1243_v35 = vmul.f32 %v1226_v62, %v1218_v3  ;;  %v1219_v12 = vmul.f32 %v2871_v7, %v1207_v4  ;;  %v2800_v62 = vld [vmem:[#allocation18 + $0x2c0] ss:$16 sps:$4 sm:$0xff]   ;;  %v2809_v3 = vld [vmem:[#allocation18 + $0x2e8] ss:$16 sps:$4 sm:$0xff]   ;;  %v2814_v4 = vld [vmem:[#allocation18 + $0x304] ss:$16 sps:$4 sm:$0xff]  }
 0x4c3   :  { %v1245_v17 = vmul.f32 %v1234_v1, %v1220_v8  ;;  %v1221_v18 = vmul.f32 %v2873_v11, %v1209_v9  ;;  %v2811_v1 = vld [vmem:[#allocation18 + $0x2ec] ss:$16 sps:$4 sm:$0xff]   ;;  %v2815_v7 = vld [vmem:[#allocation18 + $0x308] ss:$16 sps:$4 sm:$0xff]   ;;  %v2820_v8 = vld [vmem:[#allocation18 + $0x324] ss:$16 sps:$4 sm:$0xff]  }
 0x4c4   :  { %v1244_v19 = vmul.f32 %v1230_v5, %v1219_v12  ;;  %v1268_v20 = vadd.f32 %v1251_v6, %v1243_v35  ;;  %v2817_v5 = vld [vmem:[#allocation18 + $0x30c] ss:$16 sps:$4 sm:$0xff]   ;;  %v2812_v6 = vld [vmem:[#allocation18 + $0x300] ss:$16 sps:$4 sm:$0xff]   ;;  %v2826_v11 = vld [vmem:[#allocation18 + $0x344] ss:$16 sps:$4 sm:$0xff]  }
 0x4c5   :  { %v1246_v21 = vmul.f32 %v1238_v34, %v1221_v18  ;;  %v3532_v22 = vadd.f32 %v1259_v10, %v1245_v17  ;;  %v2823_v9 = vld [vmem:[#allocation18 + $0x32c] ss:$16 sps:$4 sm:$0xff]   ;;  %v2818_v34 = vld [vmem:[#allocation18 + $0x320] ss:$16 sps:$4 sm:$0xff]   ;;  %v2821_v10 = vld [vmem:[#allocation18 + $0x328] ss:$16 sps:$4 sm:$0xff]  }
 0x4c6   :  { %v1269_v23 = vadd.f32 %v1255_v15, %v1244_v19  ;;  %vm1272_vm7 = vcmp.gt.f32.partialorder %v1268_v20, 0.0  ;;  %v1276_v13 = vmul.f32 0.2, %v1268_v20  ;;  %v2829_v35 = vld [vmem:[#allocation18 + $0x34c] ss:$16 sps:$4 sm:$0xff]  }
 0x4c7   :  { %v1271_v24 = vadd.f32 %v1263_v38, %v1246_v21  ;;  %v2824_v12 = vld [vmem:[#allocation18 + $0x340] ss:$16 sps:$4 sm:$0xff]   ;;  %v2827_v15 = vld [vmem:[#allocation18 + $0x348] ss:$16 sps:$4 sm:$0xff]   ;;  %v2832_v17 = vld [vmem:[#allocation18 + $0x364] ss:$16 sps:$4 sm:$0xff]  }
 0x4c8   :  { %vm1273_vm8 = vcmp.gt.f32.partialorder %v1269_v23, 0.0  ;;  %v1277_v26 = vmul.f32 0.2, %v1269_v23  ;;  %v1280_v28 = vsel %vm1272_vm7, %v1268_v20, %v1276_v13  ;;  %v2835_v18 = vld [vmem:[#allocation18 + $0x36c] ss:$16 sps:$4 sm:$0xff]   ;;  %vm1274_vm10 = vcmp.gt.f32.partialorder %v3532_v22, 0.0 }
 0x4c9   :  { %vm1275_vm9 = vcmp.gt.f32.partialorder %v1271_v24, 0.0  ;;  %v1279_v29 = vmul.f32 0.2, %v1271_v24  ;;  %v1284_v37 = vpack.c.bf16 %v1280_v28, %v1280_v28  ;;  %v2830_v38 = vld [vmem:[#allocation18 + $0x360] ss:$16 sps:$4 sm:$0xff]  }
 0x4ca   :  { %v1281_v30 = vsel %vm1273_vm8, %v1269_v23, %v1277_v26  ;;  %v2833_v19 = vld [vmem:[#allocation18 + $0x368] ss:$16 sps:$4 sm:$0xff]   ;;  %v2838_v20 = vld [vmem:[#allocation18 + $0x384] ss:$16 sps:$4 sm:$0xff]   ;;  %v2841_v21 = vld [vmem:[#allocation18 + $0x38c] ss:$16 sps:$4 sm:$0xff]  }
 0x4cb   :  { %v1285_v31 = vpack.c.bf16 %v1281_v30, %v1281_v30  ;;  %v1283_v36 = vsel %vm1275_vm9, %v1271_v24, %v1279_v29  ;;  %v2836_v23 = vld [vmem:[#allocation18 + $0x380] ss:$16 sps:$4 sm:$0xff]   ;;  %v2839_v13 = vld [vmem:[#allocation18 + $0x388] ss:$16 sps:$4 sm:$0xff]   ;;  %v2844_v24 = vld [vmem:[#allocation18 + $0x3a4] ss:$16 sps:$4 sm:$0xff]  }
 0x4cc   :  { %v1287_v41 = vpack.c.bf16 %v1283_v36, %v1283_v36  ;;  %v2847_v26 = vld [vmem:[#allocation18 + $0x3ac] ss:$16 sps:$4 sm:$0xff]   ;;  %v2842_v28 = vld [vmem:[#allocation18 + $0x3a0] ss:$16 sps:$4 sm:$0xff]   ;;  %v2845_v29 = vld [vmem:[#allocation18 + $0x3a8] ss:$16 sps:$4 sm:$0xff]  }
 0x4cd   :  { %2110 = vmatprep.mubr.bf16.mxu1 %v1285_v31  ;;  %2192 = vmatprep.mubr.bf16.mxu0 %v1285_v31  ;;  %v2850_v30 = vld [vmem:[#allocation18 + $0x3c4] ss:$16 sps:$4 sm:$0xff]   ;;  %v2853_v31 = vld [vmem:[#allocation18 + $0x3cc] ss:$16 sps:$4 sm:$0xff]  }
 0x4ce   :  { %2111 = vmatmul.mubr.bf16.vlgmr.msra.gmra.mrb[12].mxu1 %v1284_v37  ;;  %2193 = vmatmul.mubr.bf16.vlgmr.msra.gmra.mrb[8].mxu0 %v1284_v37  ;;  %v2856_v36 = vld [vmem:[#allocation18 + $0x3e4] ss:$16 sps:$4 sm:$0xff]   ;;  %v2859_v37 = vld [vmem:[#allocation18 + $0x3ec] ss:$16 sps:$4 sm:$0xff]  }
 0x4cf   :  { %2120 = vmatpush1.bf16.msra.mxu1 %v2764_v32  ;;  %2202 = vmatpush1.bf16.msra.mxu0 %v2767_v33  ;;  %v2848_v32 = vld [vmem:[#allocation18 + $0x3c0] ss:$16 sps:$4 sm:$0xff]   ;;  %v2851_v33 = vld [vmem:[#allocation18 + $0x3c8] ss:$16 sps:$4 sm:$0xff]  }
 0x4d0   :  { %2151 = vmatprep.mubr.bf16.mxu1 %v1287_v41  ;;  %2233 = vmatprep.mubr.bf16.mxu0 %v1287_v41  ;;  %v2857_v41 = vld [vmem:[#allocation18 + $0x3e8] ss:$16 sps:$4 sm:$0xff]  }
 0x4d1   :  { %2121 = vmatprep.subr.bf16.mxu1 %v2772_v39  ;;  %2203 = vmatprep.subr.bf16.mxu0 %v2775_v40  ;;  %v1278_v39 = vmul.f32 0.2, %v3532_v22  ;;  %v2854_v40 = vld [vmem:[#allocation18 + $0x3e0] ss:$16 sps:$4 sm:$0xff]  }
 0x4d3   :  { %2122 = vmatpush1.bf16.msra.mxu1 %v2770_v42  ;;  %2204 = vmatpush1.bf16.msra.mxu0 %v2773_v43  ;;  %v1282_v42 = vsel %vm1274_vm10, %v3532_v22, %v1278_v39 }
 0x4d4   :  { %2123 = vmatprep.subr.bf16.mxu1 %v2778_v44  ;;  %2205 = vmatprep.subr.bf16.mxu0 %v2781_v45  ;;  %v1286_v43 = vpack.c.bf16 %v1282_v42, %v1282_v42  ;;  %v1416_v44 = vld [vmem:[#allocation19] sm:$0xf] }
 0x4d5   :  { %v1421_v45 = vrot.slane %v1416_v44, %v3469_v14 }
 0x4d7   :  { %2124 = vmatpush1.bf16.msra.mxu1 %v2776_v46  ;;  %2206 = vmatpush1.bf16.msra.mxu0 %v2779_v47  ;;  %v1429_v46 = vrot.slane %v1416_v44, %v3481_v25  ;;  %v1425_v47 = vrot.slane %v1416_v44, %v3472_v16 }
 0x4d8   :  { %2125 = vmatprep.subr.bf16.mxu1 %v2784_v48  ;;  %2207 = vmatprep.subr.bf16.mxu0 %v2787_v49  ;;  %v1433_v48 = vrot.slane %v1416_v44, %v3487_v27 }
 0x4db   :  { %2126 = vmatpush1.bf16.msra.mxu1 %v2782_v50  ;;  %2208 = vmatpush1.bf16.msra.mxu0 %v2785_v51 }
 0x4dc   :  { %2127 = vmatprep.subr.bf16.mxu1 %v2790_v52  ;;  %2209 = vmatprep.subr.bf16.mxu0 %v2793_v53 }
 0x4df   :  { %2128 = vmatpush1.bf16.msra.mxu1 %v2788_v54  ;;  %2210 = vmatpush1.bf16.msra.mxu0 %v2791_v55 }
 0x4e0   :  { %2129 = vmatprep.subr.bf16.mxu1 %v2796_v56  ;;  %2211 = vmatprep.subr.bf16.mxu0 %v2799_v57 }
 0x4e3   :  { %2130 = vmatpush1.bf16.msra.mxu1 %v2794_v58  ;;  %2212 = vmatpush1.bf16.msra.mxu0 %v2797_v59 }
 0x4e4   :  { %2131 = vmatprep.subr.bf16.mxu1 %v2802_v60  ;;  %2213 = vmatprep.subr.bf16.mxu0 %v2805_v61 }
 0x4e7   :  { %2132 = vmatpush1.bf16.msra.mxu1 %v2800_v62  ;;  %2214 = vmatpush1.bf16.msra.mxu0 %v2803_v63 }
 0x4e8   :  { %2133 = vmatprep.subr.bf16.mxu1 %v2808_v0  ;;  %2215 = vmatprep.subr.bf16.mxu0 %v2811_v1 }
 0x4eb   :  { %2134 = vmatpush1.bf16.msra.mxu1 %v2806_v2  ;;  %2216 = vmatpush1.bf16.msra.mxu0 %v2809_v3 }
 0x4ec   :  { %2135 = vmatprep.subr.bf16.mxu1 %v2814_v4  ;;  %2217 = vmatprep.subr.bf16.mxu0 %v2817_v5 }
 0x4ef   :  { %2136 = vmatpush1.bf16.msra.mxu1 %v2812_v6  ;;  %2218 = vmatpush1.bf16.msra.mxu0 %v2815_v7 }
 0x4f0   :  { %2137 = vmatprep.subr.bf16.mxu1 %v2820_v8  ;;  %2219 = vmatprep.subr.bf16.mxu0 %v2823_v9 }
 0x4f3   :  { %2138 = vmatpush1.bf16.msra.mxu1 %v2818_v34  ;;  %2220 = vmatpush1.bf16.msra.mxu0 %v2821_v10 }
 0x4f4   :  { %2139 = vmatprep.subr.bf16.mxu1 %v2826_v11  ;;  %2221 = vmatprep.subr.bf16.mxu0 %v2829_v35 }
 0x4f7   :  { %2140 = vmatpush1.bf16.msra.mxu1 %v2824_v12  ;;  %2222 = vmatpush1.bf16.msra.mxu0 %v2827_v15 }
 0x4f8   :  { %2141 = vmatprep.subr.bf16.mxu1 %v2832_v17  ;;  %2223 = vmatprep.subr.bf16.mxu0 %v2835_v18 }
 0x4fb   :  { %2142 = vmatpush1.bf16.msra.mxu1 %v2830_v38  ;;  %2224 = vmatpush1.bf16.msra.mxu0 %v2833_v19 }
 0x4fc   :  { %2143 = vmatprep.subr.bf16.mxu1 %v2838_v20  ;;  %2225 = vmatprep.subr.bf16.mxu0 %v2841_v21 }
 0x4ff   :  { %2144 = vmatpush1.bf16.msra.mxu1 %v2836_v23  ;;  %2226 = vmatpush1.bf16.msra.mxu0 %v2839_v13 }
 0x500   :  { %2145 = vmatprep.subr.bf16.mxu1 %v2844_v24  ;;  %2227 = vmatprep.subr.bf16.mxu0 %v2847_v26 }
 0x503   :  { %2146 = vmatpush1.bf16.msra.mxu1 %v2842_v28  ;;  %2228 = vmatpush1.bf16.msra.mxu0 %v2845_v29 }
 0x504   :  { %2147 = vmatprep.subr.bf16.mxu1 %v2850_v30  ;;  %2229 = vmatprep.subr.bf16.mxu0 %v2853_v31 }
 0x507   :  { %2148 = vmatpush1.bf16.msra.mxu1 %v2848_v32  ;;  %2230 = vmatpush1.bf16.msra.mxu0 %v2851_v33 }
 0x508   :  { %2149 = vmatprep.subr.bf16.mxu1 %v2856_v36  ;;  %2231 = vmatprep.subr.bf16.mxu0 %v2859_v37 }
 0x50b   :  { %2150 = vmatpush1.bf16.msra.mxu1 %v2854_v40  ;;  %2232 = vmatpush1.bf16.msra.mxu0 %v2857_v41 }
 0x50e   :  { %2152 = vmatmul.mubr.bf16.vlgmr.msra.gmra.mrb[12].mxu1 %v1286_v43  ;;  %2234 = vmatmul.mubr.bf16.vlgmr.msra.gmra.mrb[8].mxu0 %v1286_v43 }
 0x5e1   :  { %v2153_v49 = vpop.f32.mrb[12].mxu1  ;;  %v2235_v50 = vpop.f32.mrb[8].mxu0 }
 0x5e2   :  { %v2510_v51 = vadd.f32 %v2153_v49, %v1421_v45  ;;  %v2512_v52 = vadd.f32 %v2235_v50, %v1429_v46  ;;  %v2155_v53 = vpop.f32.mrb[13].mxu1  ;;  %v2237_v22 = vpop.f32.mrb[9].mxu0 }
 0x5e3   :  { %v2511_v54 = vadd.f32 %v2155_v53, %v1425_v47  ;;  %v2513_v55 = vadd.f32 %v2237_v22, %v1433_v48  ;;  %v2157_v56 = vpop.f32.mrb[14].mxu1  ;;  %v2239_v57 = vpop.f32.mrb[10].mxu0 }
 0x5e4   :  { %2874 = vtanh.f32 %v2510_v51  ;;  %v2158_v58 = vpop.f32.mrb[15].mxu1  ;;  %v2240_v59 = vpop.f32.mrb[11].mxu0 }
 0x5e5   :  { %2876 = vtanh.f32 %v2512_v52 }
 0x5e6   :  { %2878 = vtanh.f32 %v2511_v54 }
 0x5e7   :  { %2880 = vtanh.f32 %v2513_v55 }
 0x5ee   :  { %v2875_v14 = vpop.eup %2874 }
 0x5ef   :  { %v2877_v16 = vpop.eup %2876  ;;  %2246 = vst [vmem:[%s3572_s19] sm:$0xff] %v2875_v14 }
 0x5f0   :  { %v2879_v25 = vpop.eup %2878  ;;  %2248 = vst [vmem:[%s3572_s19 + $0x10] sm:$0xff] %v2877_v16 }
 0x5f1   :  { %v2881_v27 = vpop.eup %2880  ;;  %2247 = vst [vmem:[%s3572_s19 + $0x8] sm:$0xff] %v2879_v25 }
 0x5f2   :  { %2249 = vst [vmem:[%s3572_s19 + $0x18] sm:$0xff] %v2881_v27 }
 0x5f3   :  { %2254 = vsyncpa [#allocation3], 1 }
 0x5f4   :  { %2255 = vsyncpa [#allocation5], 1 }
 0x5f5   :  { %2256 = vsyncpa [#allocation8], 1 }
 0x5f6   :  { %2257 = vsyncpa [#allocation11], 1 }
 0x5f7   :  { %2258 = vsyncpa [#allocation14], 1 }
 0x5f8   :  { %2259 = vsyncpa [#allocation17], 1 }
 0x5f9   :  { %2260 = vsyncpa [#allocation20], 1 }

</bundles_post_ra>
